<compile_context>
chip_gen: v5e
topology: v5e:2x2
jax: 0.10.0
libtpu: 0.0.40
codegen_flags: <defaults>
</compile_context>

<pallas_src>
import functools

import jax
import jax.numpy as jnp
from jax.experimental import pallas as pl
from jax.experimental.pallas import tpu as pltpu

_HIGHEST = jax.lax.Precision.HIGHEST


# --------------------- kernel 1: project + L2-normalize -----------------------

def _project_normalize_kernel(*refs, batch_size, n_views, temperature):
    n_t = n_views - 1
    f_s_ref = refs[0]
    f_t_refs = refs[1:1 + n_t]
    (w1s_ref, b1s_ref, w2s_ref, b2s_ref,
     w1t_ref, b1t_ref, w2t_ref, b2t_ref) = refs[1 + n_t:9 + n_t]
    z_ref = refs[9 + n_t]

    inv_sqrt_t = 1.0 / float(temperature) ** 0.5

    def mlp(x, w1, b1, w2, b2):
        h = jnp.maximum(
            jnp.dot(x, w1, preferred_element_type=jnp.float32,
                    precision=_HIGHEST) + b1, 0.0)
        return jnp.dot(h, w2, preferred_element_type=jnp.float32,
                       precision=_HIGHEST) + b2

    def normalize(z):
        # F.normalize(dim=-1, eps=1e-12), with 1/sqrt(T) folded in so that the
        # Gram matrix of z directly yields logits / T.
        sq = jnp.sum(z * z, axis=-1, keepdims=True)
        return z * (jax.lax.rsqrt(jnp.maximum(sq, 1e-24)) * inv_sqrt_t)

    B = batch_size
    z_ref[0:B, :] = normalize(
        mlp(f_s_ref[...], w1s_ref[...], b1s_ref[...], w2s_ref[...], b2s_ref[...]))
    for l, f_t_ref in enumerate(f_t_refs):
        z_ref[(l + 1) * B:(l + 2) * B, :] = normalize(
            mlp(f_t_ref[...], w1t_ref[...], b1t_ref[...], w2t_ref[...], b2t_ref[...]))


# ------------------ kernel 2: flash-style tiled SupCon loss -------------------

def _supcon_tile_kernel(zr_ref, zc_ref, out_ref, denom_acc, pos_acc, *,
                        batch_size, n_views, temperature, tile_r, tile_c,
                        gram_dtype):
    i = pl.program_id(0)
    j = pl.program_id(1)

    @pl.when(j == 0)
    def _():
        denom_acc[...] = jnp.zeros_like(denom_acc)
        pos_acc[...] = jnp.zeros_like(pos_acc)

    xr = zr_ref[...]
    xc = zc_ref[...]
    if gram_dtype != jnp.float32:
        xr = xr.astype(gram_dtype)
        xc = xc.astype(gram_dtype)

    # NT Gram contraction; rows of z already carry 1/sqrt(T) -> logits directly.
    logits = jax.lax.dot_general(
        xr, xc, (((1,), (1,)), ((), ())),
        preferred_element_type=jnp.float32, precision=_HIGHEST)
    # Constant row-max: diag(z z^T) == 1/T.  The shift cancels exactly in
    # logits - log(denom); it only keeps exp() in range (no XLU row reduction).
    logits = logits - 1.0 / temperature

    row_g = i * tile_r + jax.lax.broadcasted_iota(jnp.int32, (tile_r, 1), 0)
    col_g = j * tile_c + jax.lax.broadcasted_iota(jnp.int32, (1, tile_c), 1)
    # Explicit diagonal exclusion in the denominator (kept on purpose: the
    # "rowsum(exp)-1" shortcut injects an absolute error comparable to the
    # denominator itself when off-diag similarities are small).  The compare
    # + select is VPU filler under the EUP(exp)-bound regime, i.e. free.
    not_diag = row_g != col_g
    # Positive mask (same sample, any view).  The diagonal is left in: its
    # logit is ~0 after the constant shift, so its contribution is negligible.
    pos = (row_g % batch_size) == (col_g % batch_size)

    e = jnp.exp(logits)
    denom_acc[...] += jnp.sum(jnp.where(not_diag, e, 0.0), axis=-1, keepdims=True)
    pos_acc[...] += jnp.sum(jnp.where(pos, logits, 0.0), axis=-1, keepdims=True)

    @pl.when(j == pl.num_programs(1) - 1)
    def _():
        n_pos = float(n_views - 1)
        out_ref[...] = pos_acc[...] / n_pos - jnp.log(denom_acc[...])


# ----------------------------------- wrapper ----------------------------------

def _pick_tile(n, cap):
    """Largest multiple of 8 that divides n and is <= cap."""
    best, t, limit = 8, 8, min(cap, n)
    while t <= limit:
        if n % t == 0:
            best = t
        t += 8
    return best


def _vmem_limit_bytes():
    try:
        cap = pltpu.get_tpu_info().vmem_capacity_bytes
    except Exception:
        cap = 64 * 1024 * 1024          # conservative (v7x per-core VMEM)
    return int(min(cap * 3 // 4, 100 * 1024 * 1024))


def ifacrd_loss(f_s, f_t_list, params, *, nce_t, base_temperature=None,
                tile_cap=512, gram_dtype=jnp.float32):
    """Fused IFACRD loss.  f_s: [B, s_dim]; f_t_list: list of [B, t_dim]."""
    assert len(f_t_list) >= 1, "need at least one teacher view (n_views >= 2)"
    B = f_s.shape[0]
    assert B % 8 == 0, "batch size must be a multiple of 8 (f32 sublane tiling)"
    n_views = 1 + len(f_t_list)
    N = n_views * B

    w1s, b1s, w2s, b2s = params["proj_s"]
    w1t, b1t, w2t, b2t = params["proj_t"]
    feat_dim = w2s.shape[1]
    vmem_limit = _vmem_limit_bytes()

    # ---- kernel 1: projection + normalization -> z [N, feat_dim] -----------
    proj_kernel = functools.partial(
        _project_normalize_kernel,
        batch_size=B, n_views=n_views, temperature=float(nce_t))

    def full(a):
        return pl.BlockSpec(a.shape, lambda i: (0,) * len(a.shape))

    z = pl.pallas_call(
        proj_kernel,
        out_shape=jax.ShapeDtypeStruct((N, feat_dim), jnp.float32),
        grid=(1,),
        in_specs=([full(f_s)] + [full(ft) for ft in f_t_list]
                  + [full(w1s), full(b1s), full(w2s), full(b2s),
                     full(w1t), full(b1t), full(w2t), full(b2t)]),
        out_specs=pl.BlockSpec((N, feat_dim), lambda i: (0, 0)),
        compiler_params=pltpu.CompilerParams(
            dimension_semantics=("arbitrary",),
            vmem_limit_bytes=vmem_limit),
    )(f_s, *f_t_list, w1s, b1s, w2s, b2s, w1t, b1t, w2t, b2t)

    # ---- kernel 2: tiled SupCon over the [N, N] Gram -----------------------
    tr = _pick_tile(N, tile_cap)
    tc = _pick_tile(N, tile_cap)
    sup_kernel = functools.partial(
        _supcon_tile_kernel,
        batch_size=B, n_views=n_views, temperature=float(nce_t),
        tile_r=tr, tile_c=tc, gram_dtype=gram_dtype)

    mean_log_prob_pos = pl.pallas_call(
        sup_kernel,
        out_shape=jax.ShapeDtypeStruct((N, 1), jnp.float32),
        grid=(N // tr, N // tc),
        in_specs=[pl.BlockSpec((tr, feat_dim), lambda i, j: (i, 0)),   # row tile
                  pl.BlockSpec((tc, feat_dim), lambda i, j: (j, 0))],  # col tile
        out_specs=pl.BlockSpec((tr, 1), lambda i, j: (i, 0)),
        scratch_shapes=[pltpu.VMEM((tr, 1), jnp.float32),
                        pltpu.VMEM((tr, 1), jnp.float32)],
        compiler_params=pltpu.CompilerParams(
            dimension_semantics=("parallel", "arbitrary"),
            vmem_limit_bytes=vmem_limit),
    )(z, z)

    base_t = float(nce_t) if base_temperature is None else float(base_temperature)
    return -(float(nce_t) / base_t) * jnp.mean(mean_log_prob_pos)


# ------------------------------ pure-JAX reference ----------------------------

def _ref_loss(f_s, f_t_list, params, nce_t):
    def mlp(x, w1, b1, w2, b2):
        h = jnp.maximum(jnp.dot(x, w1, precision=_HIGHEST) + b1, 0.0)
        return jnp.dot(h, w2, precision=_HIGHEST) + b2

    B = f_s.shape[0]
    views = [mlp(f_s, *params["proj_s"])] + [mlp(ft, *params["proj_t"]) for ft in f_t_list]
    z = jnp.stack(views, axis=1)                       # [B, n_views, D]
    z = z / jnp.maximum(jnp.linalg.norm(z, axis=2, keepdims=True), 1e-12)
    n_views = z.shape[1]
    cf = jnp.concatenate([z[:, v] for v in range(n_views)], axis=0)  # [N, D]
    N = cf.shape[0]
    logits = jnp.dot(cf, cf.T, precision=_HIGHEST) / nce_t
    logits = logits - jnp.max(logits, axis=1, keepdims=True)
    eye_b = jnp.eye(B, dtype=jnp.float32)
    mask = jnp.tile(eye_b, (n_views, n_views))
    logits_mask = 1.0 - jnp.eye(N, dtype=jnp.float32)
    mask = mask * logits_mask
    exp_logits = jnp.exp(logits) * logits_mask
    log_prob = logits - jnp.log(exp_logits.sum(1, keepdims=True))
    mlpp = (mask * log_prob).sum(1) / mask.sum(1)
    return jnp.mean(-(nce_t / nce_t) * mlpp)


# ------------------------------------ main ------------------------------------

if __name__ == "__main__":
    # small synthetic config
    B = 8
    s_dim, t_dim = 64, 96
    proj_hid_dim, feat_dim = 128, 128
    cont_no_l = 2            # n_views = 3 -> N = 24
    nce_t = 0.07

    key = jax.random.PRNGKey(0)
    keys = jax.random.split(key, 10)

    def init_mlp(k, in_dim, hid, out_dim):
        k1, k2 = jax.random.split(k)
        w1 = jax.random.normal(k1, (in_dim, hid), jnp.float32) * 0.05
        b1 = jnp.zeros((1, hid), jnp.float32)
        w2 = jax.random.normal(k2, (hid, out_dim), jnp.float32) * 0.05
        b2 = jnp.zeros((1, out_dim), jnp.float32)
        return (w1, b1, w2, b2)

    params = {
        "proj_s": init_mlp(keys[0], s_dim, proj_hid_dim, feat_dim),
        "proj_t": init_mlp(keys[1], t_dim, proj_hid_dim, feat_dim),
    }

    f_s = jax.random.normal(keys[2], (B, s_dim), jnp.float32)
    f_t_list = [jax.random.normal(keys[3 + i], (B, t_dim), jnp.float32)
                for i in range(cont_no_l)]

    loss = ifacrd_loss(f_s, f_t_list, params, nce_t=nce_t)
    loss = jax.block_until_ready(loss)

    ref = _ref_loss(f_s, f_t_list, params, nce_t)
    assert jnp.allclose(loss, ref, rtol=5e-3, atol=1e-3), (loss, ref)

    print("KERNEL_OK")
</pallas_src>

<mosaic_0001>
module attributes {stable_mosaic.version = 11 : i64} {
  func.func @_project_normalize_kernel(%arg0: i32, %arg1: memref<8x64xf32, #tpu.memory_space<vmem>>, %arg2: memref<8x96xf32, #tpu.memory_space<vmem>>, %arg3: memref<8x96xf32, #tpu.memory_space<vmem>>, %arg4: memref<64x128xf32, #tpu.memory_space<vmem>>, %arg5: memref<1x128xf32, #tpu.memory_space<vmem>>, %arg6: memref<128x128xf32, #tpu.memory_space<vmem>>, %arg7: memref<1x128xf32, #tpu.memory_space<vmem>>, %arg8: memref<96x128xf32, #tpu.memory_space<vmem>>, %arg9: memref<1x128xf32, #tpu.memory_space<vmem>>, %arg10: memref<128x128xf32, #tpu.memory_space<vmem>>, %arg11: memref<1x128xf32, #tpu.memory_space<vmem>>, %arg12: memref<24x128xf32, #tpu.memory_space<vmem>>) attributes {dimension_semantics = [#tpu.dimension_semantics<arbitrary>], iteration_bounds = array<i64: 1>, scalar_prefetch = 0 : i64, scratch_operands = 0 : i64, tpu.core_type = #tpu.core_type<tc>, window_params = [{pipeline_mode = #tpu.pipeline_mode<synchronous>, transform_indices = @transform_0, window_bounds = array<i64: 8, 64>}, {pipeline_mode = #tpu.pipeline_mode<synchronous>, transform_indices = @transform_1, window_bounds = array<i64: 8, 96>}, {pipeline_mode = #tpu.pipeline_mode<synchronous>, transform_indices = @transform_2, window_bounds = array<i64: 8, 96>}, {pipeline_mode = #tpu.pipeline_mode<synchronous>, transform_indices = @transform_3, window_bounds = array<i64: 64, 128>}, {pipeline_mode = #tpu.pipeline_mode<synchronous>, transform_indices = @transform_4, window_bounds = array<i64: 1, 128>}, {pipeline_mode = #tpu.pipeline_mode<synchronous>, transform_indices = @transform_5, window_bounds = array<i64: 128, 128>}, {pipeline_mode = #tpu.pipeline_mode<synchronous>, transform_indices = @transform_6, window_bounds = array<i64: 1, 128>}, {pipeline_mode = #tpu.pipeline_mode<synchronous>, transform_indices = @transform_7, window_bounds = array<i64: 96, 128>}, {pipeline_mode = #tpu.pipeline_mode<synchronous>, transform_indices = @transform_8, window_bounds = array<i64: 1, 128>}, {pipeline_mode = #tpu.pipeline_mode<synchronous>, transform_indices = @transform_9, window_bounds = array<i64: 128, 128>}, {pipeline_mode = #tpu.pipeline_mode<synchronous>, transform_indices = @transform_10, window_bounds = array<i64: 1, 128>}, {pipeline_mode = #tpu.pipeline_mode<synchronous>, transform_indices = @transform_11, window_bounds = array<i64: 24, 128>}]} {
    %c0 = arith.constant 0 : index
    %c0_0 = arith.constant 0 : index
    %0 = vector.load %arg1[%c0, %c0_0] : memref<8x64xf32, #tpu.memory_space<vmem>>, vector<8x64xf32>
    %c0_1 = arith.constant 0 : index
    %c0_2 = arith.constant 0 : index
    %1 = vector.load %arg4[%c0_1, %c0_2] : memref<64x128xf32, #tpu.memory_space<vmem>>, vector<64x128xf32>
    %c0_3 = arith.constant 0 : index
    %c0_4 = arith.constant 0 : index
    %2 = vector.load %arg5[%c0_3, %c0_4] : memref<1x128xf32, #tpu.memory_space<vmem>>, vector<1x128xf32>
    %c0_5 = arith.constant 0 : index
    %c0_6 = arith.constant 0 : index
    %3 = vector.load %arg6[%c0_5, %c0_6] : memref<128x128xf32, #tpu.memory_space<vmem>>, vector<128x128xf32>
    %c0_7 = arith.constant 0 : index
    %c0_8 = arith.constant 0 : index
    %4 = vector.load %arg7[%c0_7, %c0_8] : memref<1x128xf32, #tpu.memory_space<vmem>>, vector<1x128xf32>
    %cst = arith.constant dense<0.000000e+00> : vector<8x128xf32>
    %5 = tpu.matmul %0, %1, %cst {dimension_numbers = #tpu.dot_dimension_numbers<[1], [0], [0], [1], [0, 0, 1, 1], [], []>, precision = #tpu.contract_precision<fp32>} : vector<8x64xf32>, vector<64x128xf32>, vector<8x128xf32> -> vector<8x128xf32>
    %6 = vector.broadcast %2 : vector<1x128xf32> to vector<8x128xf32>
    %7 = arith.addf %5, %6 : vector<8x128xf32>
    %cst_9 = arith.constant 0.000000e+00 : f32
    %8 = vector.broadcast %cst_9 : f32 to vector<8x128xf32>
    %9 = arith.maximumf %7, %8 : vector<8x128xf32>
    %cst_10 = arith.constant dense<0.000000e+00> : vector<8x128xf32>
    %10 = tpu.matmul %9, %3, %cst_10 {dimension_numbers = #tpu.dot_dimension_numbers<[1], [0], [0], [1], [0, 0, 1, 1], [], []>, precision = #tpu.contract_precision<fp32>} : vector<8x128xf32>, vector<128x128xf32>, vector<8x128xf32> -> vector<8x128xf32>
    %11 = vector.broadcast %4 : vector<1x128xf32> to vector<8x128xf32>
    %12 = arith.addf %10, %11 : vector<8x128xf32>
    %13 = arith.mulf %12, %12 : vector<8x128xf32>
    %cst_11 = arith.constant dense<0.000000e+00> : vector<8xf32>
    %14 = vector.multi_reduction <add>, %13, %cst_11 [1] : vector<8x128xf32> to vector<8xf32>
    %15 = vector.shape_cast %14 : vector<8xf32> to vector<8x1xf32>
    %cst_12 = arith.constant 1.000000e-24 : f32
    %16 = vector.broadcast %cst_12 : f32 to vector<8x1xf32>
    %17 = arith.maximumf %15, %16 : vector<8x1xf32>
    %18 = math.rsqrt %17 : vector<8x1xf32>
    %cst_13 = arith.constant 3.77964473 : f32
    %19 = vector.broadcast %cst_13 : f32 to vector<8x1xf32>
    %20 = arith.mulf %18, %19 : vector<8x1xf32>
    %21 = vector.broadcast %20 : vector<8x1xf32> to vector<8x128xf32>
    %22 = arith.mulf %12, %21 : vector<8x128xf32>
    %c0_14 = arith.constant 0 : index
    %c0_15 = arith.constant 0 : index
    %23 = vector.load %arg12[%c0_14, %c0_15] : memref<24x128xf32, #tpu.memory_space<vmem>>, vector<8x128xf32>
    tpu.vector_store %arg12[%c0_14, %c0_15], %22 {strides = array<i32>} : memref<24x128xf32, #tpu.memory_space<vmem>>, vector<8x128xf32>,
    %c0_16 = arith.constant 0 : index
    %c0_17 = arith.constant 0 : index
    %24 = vector.load %arg2[%c0_16, %c0_17] : memref<8x96xf32, #tpu.memory_space<vmem>>, vector<8x96xf32>
    %c0_18 = arith.constant 0 : index
    %c0_19 = arith.constant 0 : index
    %25 = vector.load %arg8[%c0_18, %c0_19] : memref<96x128xf32, #tpu.memory_space<vmem>>, vector<96x128xf32>
    %c0_20 = arith.constant 0 : index
    %c0_21 = arith.constant 0 : index
    %26 = vector.load %arg9[%c0_20, %c0_21] : memref<1x128xf32, #tpu.memory_space<vmem>>, vector<1x128xf32>
    %c0_22 = arith.constant 0 : index
    %c0_23 = arith.constant 0 : index
    %27 = vector.load %arg10[%c0_22, %c0_23] : memref<128x128xf32, #tpu.memory_space<vmem>>, vector<128x128xf32>
    %c0_24 = arith.constant 0 : index
    %c0_25 = arith.constant 0 : index
    %28 = vector.load %arg11[%c0_24, %c0_25] : memref<1x128xf32, #tpu.memory_space<vmem>>, vector<1x128xf32>
    %cst_26 = arith.constant dense<0.000000e+00> : vector<8x128xf32>
    %29 = tpu.matmul %24, %25, %cst_26 {dimension_numbers = #tpu.dot_dimension_numbers<[1], [0], [0], [1], [0, 0, 1, 1], [], []>, precision = #tpu.contract_precision<fp32>} : vector<8x96xf32>, vector<96x128xf32>, vector<8x128xf32> -> vector<8x128xf32>
    %30 = vector.broadcast %26 : vector<1x128xf32> to vector<8x128xf32>
    %31 = arith.addf %29, %30 : vector<8x128xf32>
    %cst_27 = arith.constant 0.000000e+00 : f32
    %32 = vector.broadcast %cst_27 : f32 to vector<8x128xf32>
    %33 = arith.maximumf %31, %32 : vector<8x128xf32>
    %cst_28 = arith.constant dense<0.000000e+00> : vector<8x128xf32>
    %34 = tpu.matmul %33, %27, %cst_28 {dimension_numbers = #tpu.dot_dimension_numbers<[1], [0], [0], [1], [0, 0, 1, 1], [], []>, precision = #tpu.contract_precision<fp32>} : vector<8x128xf32>, vector<128x128xf32>, vector<8x128xf32> -> vector<8x128xf32>
    %35 = vector.broadcast %28 : vector<1x128xf32> to vector<8x128xf32>
    %36 = arith.addf %34, %35 : vector<8x128xf32>
    %37 = arith.mulf %36, %36 : vector<8x128xf32>
    %cst_29 = arith.constant dense<0.000000e+00> : vector<8xf32>
    %38 = vector.multi_reduction <add>, %37, %cst_29 [1] : vector<8x128xf32> to vector<8xf32>
    %39 = vector.shape_cast %38 : vector<8xf32> to vector<8x1xf32>
    %cst_30 = arith.constant 1.000000e-24 : f32
    %40 = vector.broadcast %cst_30 : f32 to vector<8x1xf32>
    %41 = arith.maximumf %39, %40 : vector<8x1xf32>
    %42 = math.rsqrt %41 : vector<8x1xf32>
    %cst_31 = arith.constant 3.77964473 : f32
    %43 = vector.broadcast %cst_31 : f32 to vector<8x1xf32>
    %44 = arith.mulf %42, %43 : vector<8x1xf32>
    %45 = vector.broadcast %44 : vector<8x1xf32> to vector<8x128xf32>
    %46 = arith.mulf %36, %45 : vector<8x128xf32>
    %c8 = arith.constant 8 : index
    %c0_32 = arith.constant 0 : index
    %47 = vector.load %arg12[%c8, %c0_32] : memref<24x128xf32, #tpu.memory_space<vmem>>, vector<8x128xf32>
    tpu.vector_store %arg12[%c8, %c0_32], %46 {strides = array<i32>} : memref<24x128xf32, #tpu.memory_space<vmem>>, vector<8x128xf32>,
    %c0_33 = arith.constant 0 : index
    %c0_34 = arith.constant 0 : index
    %48 = vector.load %arg3[%c0_33, %c0_34] : memref<8x96xf32, #tpu.memory_space<vmem>>, vector<8x96xf32>
    %c0_35 = arith.constant 0 : index
    %c0_36 = arith.constant 0 : index
    %49 = vector.load %arg8[%c0_35, %c0_36] : memref<96x128xf32, #tpu.memory_space<vmem>>, vector<96x128xf32>
    %c0_37 = arith.constant 0 : index
    %c0_38 = arith.constant 0 : index
    %50 = vector.load %arg9[%c0_37, %c0_38] : memref<1x128xf32, #tpu.memory_space<vmem>>, vector<1x128xf32>
    %c0_39 = arith.constant 0 : index
    %c0_40 = arith.constant 0 : index
    %51 = vector.load %arg10[%c0_39, %c0_40] : memref<128x128xf32, #tpu.memory_space<vmem>>, vector<128x128xf32>
    %c0_41 = arith.constant 0 : index
    %c0_42 = arith.constant 0 : index
    %52 = vector.load %arg11[%c0_41, %c0_42] : memref<1x128xf32, #tpu.memory_space<vmem>>, vector<1x128xf32>
    %cst_43 = arith.constant dense<0.000000e+00> : vector<8x128xf32>
    %53 = tpu.matmul %48, %49, %cst_43 {dimension_numbers = #tpu.dot_dimension_numbers<[1], [0], [0], [1], [0, 0, 1, 1], [], []>, precision = #tpu.contract_precision<fp32>} : vector<8x96xf32>, vector<96x128xf32>, vector<8x128xf32> -> vector<8x128xf32>
    %54 = vector.broadcast %50 : vector<1x128xf32> to vector<8x128xf32>
    %55 = arith.addf %53, %54 : vector<8x128xf32>
    %cst_44 = arith.constant 0.000000e+00 : f32
    %56 = vector.broadcast %cst_44 : f32 to vector<8x128xf32>
    %57 = arith.maximumf %55, %56 : vector<8x128xf32>
    %cst_45 = arith.constant dense<0.000000e+00> : vector<8x128xf32>
    %58 = tpu.matmul %57, %51, %cst_45 {dimension_numbers = #tpu.dot_dimension_numbers<[1], [0], [0], [1], [0, 0, 1, 1], [], []>, precision = #tpu.contract_precision<fp32>} : vector<8x128xf32>, vector<128x128xf32>, vector<8x128xf32> -> vector<8x128xf32>
    %59 = vector.broadcast %52 : vector<1x128xf32> to vector<8x128xf32>
    %60 = arith.addf %58, %59 : vector<8x128xf32>
    %61 = arith.mulf %60, %60 : vector<8x128xf32>
    %cst_46 = arith.constant dense<0.000000e+00> : vector<8xf32>
    %62 = vector.multi_reduction <add>, %61, %cst_46 [1] : vector<8x128xf32> to vector<8xf32>
    %63 = vector.shape_cast %62 : vector<8xf32> to vector<8x1xf32>
    %cst_47 = arith.constant 1.000000e-24 : f32
    %64 = vector.broadcast %cst_47 : f32 to vector<8x1xf32>
    %65 = arith.maximumf %63, %64 : vector<8x1xf32>
    %66 = math.rsqrt %65 : vector<8x1xf32>
    %cst_48 = arith.constant 3.77964473 : f32
    %67 = vector.broadcast %cst_48 : f32 to vector<8x1xf32>
    %68 = arith.mulf %66, %67 : vector<8x1xf32>
    %69 = vector.broadcast %68 : vector<8x1xf32> to vector<8x128xf32>
    %70 = arith.mulf %60, %69 : vector<8x128xf32>
    %c16 = arith.constant 16 : index
    %c0_49 = arith.constant 0 : index
    %71 = vector.load %arg12[%c16, %c0_49] : memref<24x128xf32, #tpu.memory_space<vmem>>, vector<8x128xf32>
    tpu.vector_store %arg12[%c16, %c0_49], %70 {strides = array<i32>} : memref<24x128xf32, #tpu.memory_space<vmem>>, vector<8x128xf32>,
    return
  }
  func.func @transform_0(%arg0: i32) -> (i32, i32) {
    %c0_i32 = arith.constant 0 : i32
    %c0_i32_0 = arith.constant 0 : i32
    %c0_i32_1 = arith.constant 0 : i32
    return %c0_i32, %c0_i32_0 : i32, i32
  }
  func.func @transform_1(%arg0: i32) -> (i32, i32) {
    %c0_i32 = arith.constant 0 : i32
    %c0_i32_0 = arith.constant 0 : i32
    %c0_i32_1 = arith.constant 0 : i32
    return %c0_i32, %c0_i32_0 : i32, i32
  }
  func.func @transform_2(%arg0: i32) -> (i32, i32) {
    %c0_i32 = arith.constant 0 : i32
    %c0_i32_0 = arith.constant 0 : i32
    %c0_i32_1 = arith.constant 0 : i32
    return %c0_i32, %c0_i32_0 : i32, i32
  }
  func.func @transform_3(%arg0: i32) -> (i32, i32) {
    %c0_i32 = arith.constant 0 : i32
    %c0_i32_0 = arith.constant 0 : i32
    %c0_i32_1 = arith.constant 0 : i32
    return %c0_i32, %c0_i32_0 : i32, i32
  }
  func.func @transform_4(%arg0: i32) -> (i32, i32) {
    %c0_i32 = arith.constant 0 : i32
    %c0_i32_0 = arith.constant 0 : i32
    %c0_i32_1 = arith.constant 0 : i32
    return %c0_i32, %c0_i32_0 : i32, i32
  }
  func.func @transform_5(%arg0: i32) -> (i32, i32) {
    %c0_i32 = arith.constant 0 : i32
    %c0_i32_0 = arith.constant 0 : i32
    %c0_i32_1 = arith.constant 0 : i32
    return %c0_i32, %c0_i32_0 : i32, i32
  }
  func.func @transform_6(%arg0: i32) -> (i32, i32) {
    %c0_i32 = arith.constant 0 : i32
    %c0_i32_0 = arith.constant 0 : i32
    %c0_i32_1 = arith.constant 0 : i32
    return %c0_i32, %c0_i32_0 : i32, i32
  }
  func.func @transform_7(%arg0: i32) -> (i32, i32) {
    %c0_i32 = arith.constant 0 : i32
    %c0_i32_0 = arith.constant 0 : i32
    %c0_i32_1 = arith.constant 0 : i32
    return %c0_i32, %c0_i32_0 : i32, i32
  }
  func.func @transform_8(%arg0: i32) -> (i32, i32) {
    %c0_i32 = arith.constant 0 : i32
    %c0_i32_0 = arith.constant 0 : i32
    %c0_i32_1 = arith.constant 0 : i32
    return %c0_i32, %c0_i32_0 : i32, i32
  }
  func.func @transform_9(%arg0: i32) -> (i32, i32) {
    %c0_i32 = arith.constant 0 : i32
    %c0_i32_0 = arith.constant 0 : i32
    %c0_i32_1 = arith.constant 0 : i32
    return %c0_i32, %c0_i32_0 : i32, i32
  }
  func.func @transform_10(%arg0: i32) -> (i32, i32) {
    %c0_i32 = arith.constant 0 : i32
    %c0_i32_0 = arith.constant 0 : i32
    %c0_i32_1 = arith.constant 0 : i32
    return %c0_i32, %c0_i32_0 : i32, i32
  }
  func.func @transform_11(%arg0: i32) -> (i32, i32) {
    %c0_i32 = arith.constant 0 : i32
    %c0_i32_0 = arith.constant 0 : i32
    %c0_i32_1 = arith.constant 0 : i32
    return %c0_i32, %c0_i32_0 : i32, i32
  }
}

</mosaic_0001>

<bundles_post_ra>
// kernel: tpu_custom_call.1
= control target key start
LH: loop header
LB: loop body
LE: loop exit
PB: predicated region body
PF: predicated region fallthrough
CT: control target
= control target key end

     0   :  { %16 = vsyncpa [#allocation3], 0  ;;  %s3553_s0 = inlined_call_operand.hbm [shape: f32[8,64], index: 0, kind: input, shape index: {}]   ;;  %s3554_s1 = inlined_call_operand.hbm [shape: f32[8,96], index: 1, kind: input, shape index: {}]   ;;  %s3555_s2 = inlined_call_operand.hbm [shape: f32[8,96], index: 2, kind: input, shape index: {}]   ;;  %s3556_s3 = inlined_call_operand.hbm [shape: f32[64,128], index: 3, kind: input, shape index: {}]   ;;  %s3557_s4 = inlined_call_operand.vmem [shape: f32[1,128], index: 4, kind: input, shape index: {}]   ;;  %s3558_s5 = inlined_call_operand.hbm [shape: f32[128,128], index: 5, kind: input, shape index: {}]   ;;  %s3559_s6 = inlined_call_operand.vmem [shape: f32[1,128], index: 6, kind: input, shape index: {}]   ;;  %s3560_s7 = inlined_call_operand.hbm [shape: f32[96,128], index: 7, kind: input, shape index: {}]   ;;  %s3561_s8 = inlined_call_operand.vmem [shape: f32[1,128], index: 8, kind: input, shape index: {}]   ;;  %s3562_s9 = inlined_call_operand.hbm [shape: f32[128,128], index: 9, kind: input, shape index: {}]   ;;  %s3563_s10 = inlined_call_operand.vmem [shape: f32[1,128], index: 10, kind: input, shape index: {}]   ;;  %s3564_s11 = inlined_call_operand.hbm [shape: f32[24,128], index: 11, kind: output, shape index: {}]  }
   0x1   :  { %17 = vsyncpa [#allocation6], 0 }
   0x2   :  { %18 = vsyncpa [#allocation9], 0 }
   0x3   :  { %19 = vsyncpa [#allocation12], 0  ;;  %s37_s19 = sshll.u32 %s3554_s1, 4  ;;  %s38_s19 = int_to_ptr.hbm [resolvable:$true] %s37_s19 }
   0x4   :  { %20 = vsyncpa [#allocation4], 0  ;;  %s2398_s20 = smov [#allocation5]   ;;  %s58_s24 = sshll.u32 %s3556_s3, 4  ;;  %s59_s24 = int_to_ptr.hbm [resolvable:$true] %s58_s24 }
   0x5   :  { %s39_s21 = sshll.u32 %s2398_s20, 4  ;;  %s2399_s25 = smov [#allocation8]   ;;  %s40_s21 = int_to_ptr.vmem [resolvable:$true] %s39_s21 }
   0x6   :  { %42 = dma.hbm_to_vmem [thread:$0]  %s38_s19, 128, %s40_s21, [#allocation6]  }
   0x7   :  { %s60_s26 = sshll.u32 %s2399_s25, 4  ;;  %s2400_s27 = smov 128   ;;  %s61_s26 = int_to_ptr.vmem [resolvable:$true] %s60_s26 }
   0x8   :  { %s2401_s28 = smov 8   ;;  %s88_s30 = sshll.u32 %s3560_s7, 4  ;;  %s89_s30 = int_to_ptr.hbm [resolvable:$true] %s88_s30 }
   0x9   :  { %66 = dma.hbm_to_vmem [thread:$0]  %s59_s24, 1024, %s61_s26, [#allocation9], %s2400_s27, %s2400_s27, %s2401_s28  }
   0xa   :  { %s2402_s12 = smov [#allocation11]   ;;  %s26_s15 = sshll.u32 %s3553_s0, 4  ;;  %s27_s15 = int_to_ptr.hbm [resolvable:$true] %s26_s15 }
   0xb   :  { %s90_s13 = sshll.u32 %s2402_s12, 4  ;;  %s2403_s16 = smov [#allocation2]   ;;  %s91_s13 = int_to_ptr.vmem [resolvable:$true] %s90_s13 }
   0xc   :  { %96 = dma.hbm_to_vmem [thread:$0]  %s89_s30, 1536, %s91_s13, [#allocation12], %s2400_s27, %s2400_s27, %s2401_s28  }
   0xd   :  { %s28_s17 = sshll.u32 %s2403_s16, 4  ;;  %s48_s20 = sshll.u32 %s3555_s2, 4  ;;  %s29_s17 = int_to_ptr.vmem [resolvable:$true] %s28_s17  ;;  %s49_s20 = int_to_ptr.hbm [resolvable:$true] %s48_s20 }
   0xe   :  { %31 = dma.hbm_to_vmem [thread:$0]  %s27_s15, 128, %s29_s17, [#allocation3]  }
   0xf   :  { %s73_s22 = sshll.u32 %s3558_s5, 4  ;;  %s2404_s23 = smov [#allocation7]   ;;  %s74_s22 = int_to_ptr.hbm [resolvable:$true] %s73_s22 }
  0x10   :  { %s50_s0 = sshll.u32 %s2404_s23, 4  ;;  %s2405_s24 = smov [#allocation10]   ;;  %s51_s0 = int_to_ptr.vmem [resolvable:$true] %s50_s0 }
  0x11   :  { %53 = dma.hbm_to_vmem [thread:$0]  %s49_s20, 128, %s51_s0, [#allocation6]  }
  0x12   :  { %s75_s25 = sshll.u32 %s2405_s24, 4  ;;  %s103_s29 = sshll.u32 %s3562_s9, 4  ;;  %s76_s25 = int_to_ptr.vmem [resolvable:$true] %s75_s25  ;;  %s104_s29 = int_to_ptr.hbm [resolvable:$true] %s103_s29 }
  0x13   :  { %81 = dma.hbm_to_vmem [thread:$0]  %s74_s22, 2048, %s76_s25, [#allocation9], %s2400_s27, %s2400_s27, %s2401_s28  }
  0x14   :  { %s2406_s2 = smov [#allocation13]  }
  0x15   :  { %s105_s30 = sshll.u32 %s2406_s2, 4  ;;  %s106_s30 = int_to_ptr.vmem [resolvable:$true] %s105_s30 }
  0x16   :  { %111 = dma.hbm_to_vmem [thread:$0]  %s104_s29, 2048, %s106_s30, [#allocation12], %s2400_s27, %s2400_s27, %s2401_s28  }
  0x17   :  { %2388 = dma.done.wait [#allocation3], 128  }
  0x18   :  { %2389 = vsyncadd [#allocation3], 4294967168 }
  0x19   :  { %2390 = dma.done.wait [#allocation6], 256  }
  0x1a   :  { %2391 = vsyncadd [#allocation6], 4294967040 }
  0x1b   :  { %2392 = dma.done.wait [#allocation9], 3072  }
  0x1c   :  { %2393 = vsyncadd [#allocation9], 4294964224 }
  0x1d   :  { %2394 = dma.done.wait [#allocation12], 3584  }
  0x1e   :  { %2395 = vsyncadd [#allocation12], 4294963712  ;;  %v150_v0 = vld [vmem:[#allocation8 + $0x38] sm:$0xff]  ;;  %v149_v1 = vld [vmem:[#allocation8 + $0x30] sm:$0xff]  ;;  %vm172_vm0 = vcmask 523264   ;;  %vm809_vm1 = vcmask 785408  }
  0x1f   :  { %v148_v2 = vld [vmem:[#allocation8 + $0x28] sm:$0xff]  ;;  %v2501_v3 = vand.u32 4294901760, %v150_v0  ;;  %v2503_v4 = vand.u32 4294901760, %v149_v1  ;;  %v147_v6 = vld [vmem:[#allocation8 + $0x20] sm:$0xff]  ;;  %v146_v7 = vld [vmem:[#allocation8 + $0x18] sm:$0xff]  ;;  %s2158_s7 = sshll.u32 %s3564_s11, 4  ;;  %s2159_s7 = int_to_ptr.hbm [resolvable:$true] %s2158_s7 }
  0x20   :  { %v2505_v5 = vand.u32 4294901760, %v148_v2  ;;  %v145_v8 = vld [vmem:[#allocation8 + $0x10] sm:$0xff]  ;;  %v2507_v9 = vand.u32 4294901760, %v147_v6  ;;  %v2509_v10 = vand.u32 4294901760, %v146_v7  ;;  %v144_v12 = vld [vmem:[#allocation8 + $0x8] sm:$0xff]  ;;  %v143_v13 = vld [vmem:[#allocation8] sm:$0xff] }
  0x21   :  { %v2511_v11 = vand.u32 4294901760, %v145_v8  ;;  %185 = vmatpush.msra.mxu2 %v2501_v3  ;;  %v218_v14 = vsub.f32 %v150_v0, %v2501_v3  ;;  %v2516_v15 = vsub.f32 %v149_v1, %v2503_v4  ;;  %v2521_v17 = vand.u32 4294901760, %v144_v12  ;;  %393 = vmatpush.msra.mxu1 %v2501_v3  ;;  %v142_v32 = vld [vmem:[#allocation2] sm:$0xff]  ;;  %v167_v49 = vld [vmem:[#allocation10 + $0x78] sm:$0xff]  ;;  %v166_v53 = vld [vmem:[#allocation10 + $0x70] sm:$0xff] }
  0x22   :  { %v2519_v16 = vsub.f32 %v148_v2, %v2505_v5  ;;  %v2525_v18 = vsub.f32 %v147_v6, %v2507_v9  ;;  %v2528_v19 = vsub.f32 %v146_v7, %v2509_v10  ;;  %v2536_v24 = vand.u32 4294901760, %v143_v13  ;;  %v165_v57 = vld [vmem:[#allocation10 + $0x68] sm:$0xff]  ;;  %v164_v60 = vld [vmem:[#allocation10 + $0x60] sm:$0xff]  ;;  %v163_v1 = vld [vmem:[#allocation10 + $0x58] sm:$0xff] }
  0x23   :  { %v2531_v20 = vsub.f32 %v145_v8, %v2511_v11  ;;  %187 = vmatpush.msra.mxu2 %v2503_v4  ;;  %v219_v21 = vand.u32 4294901760, %v218_v14  ;;  %v225_v22 = vand.u32 4294901760, %v2516_v15  ;;  %395 = vmatpush.msra.mxu1 %v2503_v4  ;;  %v2541_v26 = vsub.f32 %v144_v12, %v2521_v17  ;;  %v162_v6 = vld [vmem:[#allocation10 + $0x50] sm:$0xff]  ;;  %v161_v12 = vld [vmem:[#allocation10 + $0x48] sm:$0xff] }
  0x24   :  { %v231_v23 = vand.u32 4294901760, %v2519_v16  ;;  %v237_v25 = vand.u32 4294901760, %v2525_v18  ;;  %v243_v30 = vand.u32 4294901760, %v2528_v19  ;;  %v2552_v36 = vsub.f32 %v143_v13, %v2536_v24 }
  0x25   :  { %189 = vmatpush.msra.mxu2 %v2505_v5  ;;  %v220_v27 = vsub.f32 %v218_v14, %v219_v21  ;;  %v226_v28 = vsub.f32 %v2516_v15, %v225_v22  ;;  %350 = vmatpush.msra.mxu0 %v219_v21  ;;  %v249_v31 = vand.u32 4294901760, %v2531_v20  ;;  %v255_v39 = vand.u32 4294901760, %v2541_v26 }
  0x26   :  { %v232_v29 = vsub.f32 %v2519_v16, %v231_v23  ;;  %397 = vmatpush.msra.mxu1 %v2505_v5  ;;  %v238_v35 = vsub.f32 %v2525_v18, %v237_v25  ;;  %v244_v38 = vsub.f32 %v2528_v19, %v243_v30  ;;  %v174_v40 = vsel %vm172_vm0, %v142_v32, 0 }
  0x27   :  { %191 = vmatpush.msra.mxu2 %v2507_v9  ;;  %v221_v33 = vand.u32 4294901760, %v220_v27  ;;  %v227_v34 = vand.u32 4294901760, %v226_v28  ;;  %354 = vmatpush.msra.mxu0 %v225_v22  ;;  %v200_v41 = vand.u32 4294901760, %v174_v40  ;;  %v250_v43 = vsub.f32 %v2531_v20, %v249_v31  ;;  %v158_v22 = vld [vmem:[#allocation10 + $0x30] sm:$0xff]  ;;  %v157_v28 = vld [vmem:[#allocation10 + $0x28] sm:$0xff] }
  0x28   :  { %399 = vmatpush.msra.mxu1 %v2507_v9  ;;  %v233_v37 = vand.u32 4294901760, %v232_v29  ;;  %v239_v42 = vand.u32 4294901760, %v238_v35  ;;  %v261_v44 = vand.u32 4294901760, %v2552_v36  ;;  %v245_v46 = vand.u32 4294901760, %v244_v38  ;;  %v155_v38 = vld [vmem:[#allocation10 + $0x18] sm:$0xff] }
  0x29   :  { %222 = vmatpush.msra.mxu3 %v221_v33  ;;  %193 = vmatpush.msra.mxu2 %v2509_v10  ;;  %v2562_v45 = vsub.f32 %v174_v40, %v200_v41  ;;  %v256_v47 = vsub.f32 %v2541_v26, %v255_v39  ;;  %v251_v50 = vand.u32 4294901760, %v250_v43  ;;  %v2575_v55 = vand.u32 4294901760, %v167_v49  ;;  %v156_v33 = vld [vmem:[#allocation10 + $0x20] sm:$0xff] }
  0x2a   :  { %358 = vmatpush.msra.mxu0 %v231_v23  ;;  %401 = vmatpush.msra.mxu1 %v2509_v10  ;;  %v262_v51 = vsub.f32 %v2552_v36, %v261_v44  ;;  %v2578_v59 = vand.u32 4294901760, %v166_v53  ;;  %v2584_v62 = vand.u32 4294901760, %v165_v57  ;;  %v2590_v0 = vand.u32 4294901760, %v164_v60 }
  0x2b   :  { %228 = vmatpush.msra.mxu3 %v227_v34  ;;  %195 = vmatpush.msra.mxu2 %v2511_v11  ;;  %v202_v48 = vand.u32 4294901760, %v2562_v45  ;;  %v257_v54 = vand.u32 4294901760, %v256_v47  ;;  %v2582_v61 = vsub.f32 %v167_v49, %v2575_v55  ;;  %v2604_v8 = vand.u32 4294901760, %v163_v1 }
  0x2c   :  { %362 = vmatpush.msra.mxu0 %v237_v25  ;;  %403 = vmatpush.msra.mxu1 %v2511_v11  ;;  %v263_v58 = vand.u32 4294901760, %v262_v51  ;;  %v2588_v63 = vsub.f32 %v166_v53, %v2578_v59  ;;  %v2596_v2 = vsub.f32 %v165_v57, %v2584_v62  ;;  %v2602_v7 = vsub.f32 %v164_v60, %v2590_v0 }
  0x2d   :  { %234 = vmatpush.msra.mxu3 %v233_v37  ;;  %197 = vmatpush.msra.mxu2 %v2521_v17  ;;  %v203_v52 = vsub.f32 %v2562_v45, %v202_v48  ;;  %v2675_v35 = vand.u32 4294901760, %v157_v28  ;;  %v2686_v40 = vand.u32 4294901760, %v156_v33 }
  0x2e   :  { %366 = vmatpush.msra.mxu0 %v243_v30  ;;  %405 = vmatpush.msra.mxu1 %v2521_v17  ;;  %v466_v13 = vand.u32 4294901760, %v2588_v63  ;;  %v478_v21 = vand.u32 4294901760, %v2602_v7  ;;  %v2660_v30 = vand.u32 4294901760, %v158_v22 }
  0x2f   :  { %240 = vmatpush.msra.mxu3 %v239_v42  ;;  %199 = vmatpush.msra.mxu2 %v2536_v24  ;;  %v204_v56 = vand.u32 4294901760, %v203_v52  ;;  %v2708_v51 = vsub.f32 %v156_v33, %v2686_v40 }
  0x30   :  { %370 = vmatpush.msra.mxu0 %v249_v31  ;;  %407 = vmatpush.msra.mxu1 %v2536_v24  ;;  %v479_v31 = vsub.f32 %v2602_v7, %v478_v21 }
  0x31   :  { %280 = vmatpush.msrb.mxu2 %v218_v14  ;;  %246 = vmatpush.msra.mxu3 %v245_v46  ;;  %v160_v14 = vld [vmem:[#allocation10 + $0x40] sm:$0xff]  ;;  %v2698_v46 = vand.u32 4294901760, %v155_v38 }
  0x32   :  { %374 = vmatpush.msra.mxu0 %v255_v39  ;;  %409 = vmatmul.f32.vlgmr.msra.gmra.mxu1 %v200_v41  ;;  %v2684_v39 = vsub.f32 %v158_v22, %v2660_v30 }
  0x33   :  { %283 = vmatpush.msrb.mxu2 %v2516_v15  ;;  %252 = vmatpush.msra.mxu3 %v251_v50  ;;  %v2622_v15 = vand.u32 4294901760, %v161_v12  ;;  %v153_v50 = vld [vmem:[#allocation10 + $0x8] sm:$0xff]  ;;  %v2720_v57 = vsub.f32 %v155_v38, %v2698_v46 }
  0x34   :  { %378 = vmatpush.msra.mxu0 %v261_v44  ;;  %205 = vmatmul.f32.vlgmr.msra.gmra.mxu2 %v204_v56  ;;  %v154_v44 = vld [vmem:[#allocation10 + $0x10] sm:$0xff]  ;;  %v514_v56 = vand.u32 4294901760, %v2684_v39 }
  0x35   :  { %286 = vmatpush.msrb.mxu2 %v2519_v16  ;;  %258 = vmatpush.msra.mxu3 %v257_v54  ;;  %v472_v16 = vand.u32 4294901760, %v2596_v2  ;;  %v2645_v23 = vsub.f32 %v161_v12, %v2622_v15  ;;  %v2710_v52 = vand.u32 4294901760, %v154_v44 }
  0x36   :  { %380 = vmatmul.f32.vlgmr.msra.gmra.mxu0 %v200_v41  ;;  %614 = vmatpush.msrb.mxu1 %v2575_v55 }
  0x37   :  { %289 = vmatpush.msrb.mxu2 %v2525_v18  ;;  %264 = vmatpush.msra.mxu3 %v263_v58  ;;  %v159_v18 = vld [vmem:[#allocation10 + $0x38] sm:$0xff]  ;;  %v496_v37 = vand.u32 4294901760, %v2645_v23  ;;  %v2722_v58 = vand.u32 4294901760, %v153_v50  ;;  %v2732_v12 = vsub.f32 %v154_v44, %v2710_v52 }
  0x38   :  { %561 = vmatpush.msrb.mxu0 %v2582_v61  ;;  %266 = vmatmul.f32.vlgmr.msra.gmra.mxu3 %v200_v41  ;;  %v2647_v25 = vand.u32 4294901760, %v159_v18  ;;  %v480_v41 = vand.u32 4294901760, %v479_v31 }
  0x39   :  { %317 = vmatpush.msrb.mxu3 %v2501_v3  ;;  %292 = vmatpush.msrb.mxu2 %v2528_v19  ;;  %v460_v3 = vand.u32 4294901760, %v2582_v61  ;;  %v538_v31 = vand.u32 4294901760, %v2732_v12 }
  0x3a   :  { %564 = vmatpush.msrb.mxu0 %v2588_v63  ;;  %616 = vmatpush.msrb.mxu1 %v2578_v59  ;;  %v2673_v34 = vsub.f32 %v159_v18, %v2647_v25  ;;  %v526_v18 = vand.u32 4294901760, %v2708_v51 }
  0x3b   :  { %319 = vmatpush.msrb.mxu3 %v2503_v4  ;;  %295 = vmatpush.msrb.mxu2 %v2531_v20  ;;  %v2611_v4 = vand.u32 4294901760, %v162_v6  ;;  %v2634_v20 = vand.u32 4294901760, %v160_v14 }
  0x3c   :  { %567 = vmatpush.msrb.mxu0 %v2596_v2  ;;  %618 = vmatpush.msrb.mxu1 %v2584_v62  ;;  %v508_v49 = vand.u32 4294901760, %v2673_v34 }
  0x3d   :  { %321 = vmatpush.msrb.mxu3 %v2505_v5  ;;  %298 = vmatpush.msrb.mxu2 %v2541_v26  ;;  %v2620_v5 = vsub.f32 %v163_v1, %v2604_v8  ;;  %v2632_v19 = vsub.f32 %v162_v6, %v2611_v4  ;;  %v473_v26 = vsub.f32 %v2596_v2, %v472_v16 }
  0x3e   :  { %570 = vmatpush.msrb.mxu0 %v2602_v7  ;;  %620 = vmatpush.msrb.mxu1 %v2590_v0  ;;  %v2658_v29 = vsub.f32 %v160_v14, %v2634_v20  ;;  %v509_v1 = vsub.f32 %v2673_v34, %v508_v49 }
  0x3f   :  { %323 = vmatpush.msrb.mxu3 %v2507_v9  ;;  %301 = vmatpush.msrb.mxu2 %v2552_v36  ;;  %v461_v9 = vsub.f32 %v2582_v61, %v460_v3  ;;  %v484_v27 = vand.u32 4294901760, %v2620_v5  ;;  %v490_v32 = vand.u32 4294901760, %v2632_v19  ;;  %v786_v61 = vld [vmem:[#allocation11 + $0x50] sm:$0xff] }
  0x40   :  { %304 = vmatmul.f32.vlgmr.msrb.gmra.mxu2 %v2562_v45  ;;  %573 = vmatpush.msrb.mxu0 %v2620_v5  ;;  %v502_v43 = vand.u32 4294901760, %v2658_v29  ;;  %v2696_v45 = vsub.f32 %v157_v28, %v2675_v35  ;;  %v510_v22 = vand.u32 4294901760, %v509_v1 }
  0x41   :  { %325 = vmatpush.msrb.mxu3 %v2509_v10  ;;  %418 = vmatpush.msra.mxu2 %v2575_v55  ;;  %v467_v10 = vsub.f32 %v2588_v63, %v466_v13  ;;  %v485_v36 = vsub.f32 %v2620_v5, %v484_v27  ;;  %v491_v42 = vsub.f32 %v2632_v19, %v490_v32  ;;  %v2818_v63 = vand.u32 4294901760, %v786_v61 }
  0x42   :  { %576 = vmatpush.msrb.mxu0 %v2632_v19  ;;  %622 = vmatpush.msrb.mxu1 %v2604_v8  ;;  %v503_v54 = vsub.f32 %v2658_v29, %v502_v43  ;;  %v520_v6 = vand.u32 4294901760, %v2696_v45 }
  0x43   :  { %327 = vmatpush.msrb.mxu3 %v2511_v11  ;;  %420 = vmatpush.msra.mxu2 %v2578_v59  ;;  %v462_v11 = vand.u32 4294901760, %v461_v9  ;;  %v486_v47 = vand.u32 4294901760, %v485_v36  ;;  %v492_v53 = vand.u32 4294901760, %v491_v42  ;;  %v515_v9 = vsub.f32 %v2684_v39, %v514_v56 }
  0x44   :  { %579 = vmatpush.msrb.mxu0 %v2645_v23  ;;  %624 = vmatpush.msrb.mxu1 %v2611_v4  ;;  %v504_v14 = vand.u32 4294901760, %v503_v54 }
  0x45   :  { %329 = vmatpush.msrb.mxu3 %v2521_v17  ;;  %422 = vmatpush.msra.mxu2 %v2584_v62  ;;  %v468_v17 = vand.u32 4294901760, %v467_v10  ;;  %v2742_v10 = vsub.f32 %v153_v50, %v2722_v58  ;;  %v516_v28 = vand.u32 4294901760, %v515_v9  ;;  %v152_v50 = vld [vmem:[#allocation10] sm:$0xff] }
  0x46   :  { %582 = vmatpush.msrb.mxu0 %v2658_v29  ;;  %626 = vmatpush.msrb.mxu1 %v2622_v15 }
  0x47   :  { %331 = vmatpush.msrb.mxu3 %v2536_v24  ;;  %424 = vmatpush.msra.mxu2 %v2590_v0  ;;  %v474_v24 = vand.u32 4294901760, %v473_v26  ;;  %v532_v26 = vand.u32 4294901760, %v2720_v57  ;;  %v544_v36 = vand.u32 4294901760, %v2742_v10 }
  0x48   :  { %335 = vmatmul.f32.vlgmr.msrb.gmra.mxu3 %v202_v48  ;;  %585 = vmatpush.msrb.mxu0 %v2673_v34  ;;  %v497_v48 = vsub.f32 %v2645_v23, %v496_v37 }
  0x49   :  { %463 = vmatpush.msra.mxu3 %v462_v11  ;;  %426 = vmatpush.msra.mxu2 %v2604_v8  ;;  %v521_v11 = vsub.f32 %v2696_v45, %v520_v6  ;;  %v545_v44 = vsub.f32 %v2742_v10, %v544_v36 }
  0x4a   :  { %628 = vmatpush.msrb.mxu1 %v2634_v20  ;;  %588 = vmatpush.msrb.mxu0 %v2684_v39  ;;  %v498_v60 = vand.u32 4294901760, %v497_v48 }
  0x4b   :  { %469 = vmatpush.msra.mxu3 %v468_v17  ;;  %428 = vmatpush.msra.mxu2 %v2611_v4  ;;  %v527_v17 = vsub.f32 %v2708_v51, %v526_v18  ;;  %v522_v33 = vand.u32 4294901760, %v521_v11  ;;  %v546_v48 = vand.u32 4294901760, %v545_v44 }
  0x4c   :  { %630 = vmatpush.msrb.mxu1 %v2647_v25  ;;  %591 = vmatpush.msrb.mxu0 %v2696_v45 }
  0x4d   :  { %475 = vmatpush.msra.mxu3 %v474_v24  ;;  %430 = vmatpush.msra.mxu2 %v2622_v15  ;;  %v533_v24 = vsub.f32 %v2720_v57, %v532_v26  ;;  %v528_v38 = vand.u32 4294901760, %v527_v17 }
  0x4e   :  { %632 = vmatpush.msrb.mxu1 %v2660_v30  ;;  %594 = vmatpush.msrb.mxu0 %v2708_v51 }
  0x4f   :  { %481 = vmatpush.msra.mxu3 %v480_v41  ;;  %432 = vmatpush.msra.mxu2 %v2634_v20  ;;  %v539_v41 = vsub.f32 %v2732_v12, %v538_v31  ;;  %v534_v42 = vand.u32 4294901760, %v533_v24 }
  0x50   :  { %634 = vmatpush.msrb.mxu1 %v2675_v35  ;;  %597 = vmatpush.msrb.mxu0 %v2720_v57  ;;  %v780_v57 = vld [vmem:[#allocation11 + $0x20] sm:$0xff] }
  0x51   :  { %487 = vmatpush.msra.mxu3 %v486_v47  ;;  %434 = vmatpush.msra.mxu2 %v2647_v25  ;;  %v540_v47 = vand.u32 4294901760, %v539_v41 }
  0x52   :  { %636 = vmatpush.msrb.mxu1 %v2686_v40  ;;  %600 = vmatpush.msrb.mxu0 %v2732_v12  ;;  %v2908_v12 = vand.u32 4294901760, %v780_v57 }
  0x53   :  { %493 = vmatpush.msra.mxu3 %v492_v53  ;;  %436 = vmatpush.msra.mxu2 %v2660_v30  ;;  %v2773_v53 = vand.u32 4294901760, %v152_v50 }
  0x54   :  { %638 = vmatpush.msrb.mxu1 %v2698_v46  ;;  %603 = vmatpush.msrb.mxu0 %v2742_v10  ;;  %v779_v10 = vld [vmem:[#allocation11 + $0x18] sm:$0xff] }
  0x55   :  { %499 = vmatpush.msra.mxu3 %v498_v60  ;;  %438 = vmatpush.msra.mxu2 %v2675_v35  ;;  %v2777_v54 = vsub.f32 %v152_v50, %v2773_v53  ;;  %v2923_v11 = vand.u32 4294901760, %v779_v10  ;;  %v776_v50 = vld [vmem:[#allocation11] sm:$0xff] }
  0x56   :  { %640 = vmatpush.msrb.mxu1 %v2710_v52 }
  0x57   :  { %505 = vmatpush.msra.mxu3 %v504_v14  ;;  %440 = vmatpush.msra.mxu2 %v2686_v40  ;;  %v550_v60 = vand.u32 4294901760, %v2777_v54  ;;  %v2941_v24 = vsub.f32 %v779_v10, %v2923_v11 }
  0x58   :  { %642 = vmatpush.msrb.mxu1 %v2722_v58  ;;  %606 = vmatpush.msrb.mxu0 %v2777_v54 }
  0x59   :  { %511 = vmatpush.msra.mxu3 %v510_v22  ;;  %442 = vmatpush.msra.mxu2 %v2698_v46  ;;  %v551_v1 = vsub.f32 %v2777_v54, %v550_v60  ;;  %3642 = vst [vmem:[#allocation36_spill] sm:$0xff] %v2941_v24  ;;  %v2954_v44 = vand.u32 4294901760, %v2941_v24 }
  0x5a   :  { %644 = vmatpush.msrb.mxu1 %v2773_v53 }
  0x5b   :  { %517 = vmatpush.msra.mxu3 %v516_v28  ;;  %444 = vmatpush.msra.mxu2 %v2710_v52  ;;  %v552_v14 = vand.u32 4294901760, %v551_v1  ;;  %v778_v28 = vld [vmem:[#allocation11 + $0x10] sm:$0xff]  ;;  %3643 = vst [vmem:[#allocation37_spill] sm:$0xff] %v2954_v44  ;;  %v905_v54 = vsub.f32 %v2941_v24, %v2954_v44 }
  0x5d   :  { %523 = vmatpush.msra.mxu3 %v522_v33  ;;  %446 = vmatpush.msra.mxu2 %v2722_v58  ;;  %v2938_v33 = vand.u32 4294901760, %v778_v28 }
  0x5f   :  { %529 = vmatpush.msra.mxu3 %v528_v38  ;;  %448 = vmatpush.msra.mxu2 %v2773_v53  ;;  %v2184_v38 = vld [vmem:[%s3557_s4] ss:$0 sm:$0xff] }
  0x61   :  { %535 = vmatpush.msra.mxu3 %v534_v42  ;;  %655 = vmatpush.msrb.mxu2 %v460_v3  ;;  %v784_v3 = vld [vmem:[#allocation11 + $0x40] sm:$0xff] }
  0x62   :  { %v2841_v5 = vand.u32 4294901760, %v784_v3 }
  0x63   :  { %541 = vmatpush.msra.mxu3 %v540_v47  ;;  %659 = vmatpush.msrb.mxu2 %v466_v13 }
  0x65   :  { %547 = vmatpush.msra.mxu3 %v546_v48  ;;  %663 = vmatpush.msrb.mxu2 %v472_v16  ;;  %v783_v16 = vld [vmem:[#allocation11 + $0x38] sm:$0xff]  ;;  %v2959_v48 = vsub.f32 %v778_v28, %v2938_v33 }
  0x66   :  { %v2857_v23 = vand.u32 4294901760, %v783_v16 }
  0x67   :  { %667 = vmatpush.msrb.mxu2 %v478_v21  ;;  %553 = vmatpush.msra.mxu3 %v552_v14  ;;  %3644 = vst [vmem:[#allocation38_spill] sm:$0xff] %v2959_v48  ;;  %v2970_v14 = vand.u32 4294901760, %v2959_v48 }
  0x68   :  { %v2873_v34 = vsub.f32 %v783_v16, %v2857_v23 }
  0x69   :  { %722 = vmatpush.msrb.mxu3 %v2575_v55  ;;  %671 = vmatpush.msrb.mxu2 %v484_v27  ;;  %v787_v55 = vld [vmem:[#allocation11 + $0x58] sm:$0xff]  ;;  %v782_v27 = vld [vmem:[#allocation11 + $0x30] sm:$0xff]  ;;  %3645 = vst [vmem:[#allocation39_spill] sm:$0xff] %v2970_v14 }
  0x6a   :  { %3633 = vst [vmem:[#allocation27_spill] sm:$0xff] %v2873_v34 }
  0x6b   :  { %724 = vmatpush.msrb.mxu3 %v2578_v59  ;;  %675 = vmatpush.msrb.mxu2 %v490_v32  ;;  %v2811_v59 = vand.u32 4294901760, %v787_v55  ;;  %v2870_v32 = vand.u32 4294901760, %v782_v27 }
  0x6d   :  { %726 = vmatpush.msrb.mxu3 %v2584_v62  ;;  %679 = vmatpush.msrb.mxu2 %v496_v37  ;;  %v2816_v62 = vsub.f32 %v787_v55, %v2811_v59 }
  0x6e   :  { %818 = vmatpush.msra.mxu0 %v2811_v59 }
  0x6f   :  { %728 = vmatpush.msrb.mxu3 %v2590_v0  ;;  %683 = vmatpush.msrb.mxu2 %v502_v43  ;;  %3626 = vst [vmem:[#allocation20_spill] sm:$0xff] %v2816_v62  ;;  %v785_v0 = vld [vmem:[#allocation11 + $0x48] sm:$0xff]  ;;  %v2825_v2 = vand.u32 4294901760, %v2816_v62  ;;  %v2886_v43 = vand.u32 4294901760, %v2873_v34 }
  0x70   :  { %820 = vmatpush.msra.mxu0 %v2818_v63  ;;  %v2827_v7 = vand.u32 4294901760, %v785_v0 }
  0x71   :  { %730 = vmatpush.msrb.mxu3 %v2604_v8  ;;  %687 = vmatpush.msrb.mxu2 %v508_v49  ;;  %3627 = vst [vmem:[#allocation21_spill] sm:$0xff] %v2825_v2  ;;  %v2830_v8 = vsub.f32 %v786_v61, %v2818_v63  ;;  %v2891_v49 = vsub.f32 %v782_v27, %v2870_v32 }
  0x72   :  { %822 = vmatpush.msra.mxu0 %v2827_v7  ;;  %3635 = vst [vmem:[#allocation29_spill] sm:$0xff] %v2886_v43 }
  0x73   :  { %732 = vmatpush.msrb.mxu3 %v2611_v4  ;;  %691 = vmatpush.msrb.mxu2 %v514_v56  ;;  %3628 = vst [vmem:[#allocation22_spill] sm:$0xff] %v2830_v8  ;;  %v857_v4 = vsub.f32 %v2816_v62, %v2825_v2  ;;  %v2839_v13 = vand.u32 4294901760, %v2830_v8  ;;  %v2903_v56 = vand.u32 4294901760, %v2891_v49 }
  0x74   :  { %824 = vmatpush.msra.mxu0 %v2841_v5  ;;  %3636 = vst [vmem:[#allocation30_spill] sm:$0xff] %v2891_v49 }
  0x75   :  { %734 = vmatpush.msrb.mxu3 %v2622_v15  ;;  %695 = vmatpush.msrb.mxu2 %v520_v6  ;;  %3629 = vst [vmem:[#allocation23_spill] sm:$0xff] %v2839_v13  ;;  %v2844_v15 = vsub.f32 %v785_v0, %v2827_v7  ;;  %v2849_v19 = vand.u32 4294901760, %v857_v4  ;;  %v2976_v0 = vand.u32 4294901760, %v905_v54  ;;  %v911_v4 = vsub.f32 %v2959_v48, %v2970_v14  ;;  %v775_v54 = vld [vmem:[#allocation5] sm:$0xff] }
  0x76   :  { %826 = vmatpush.msra.mxu0 %v2857_v23  ;;  %3637 = vst [vmem:[#allocation31_spill] sm:$0xff] %v2903_v56 }
  0x77   :  { %736 = vmatpush.msrb.mxu3 %v2634_v20  ;;  %699 = vmatpush.msrb.mxu2 %v526_v18  ;;  %3630 = vst [vmem:[#allocation24_spill] sm:$0xff] %v2844_v15  ;;  %v863_v20 = vsub.f32 %v2830_v8, %v2839_v13  ;;  %v2855_v21 = vand.u32 4294901760, %v2844_v15  ;;  %v887_v18 = vsub.f32 %v2891_v49, %v2903_v56  ;;  %v2991_v27 = vand.u32 4294901760, %v911_v4 }
  0x78   :  { %859 = vmatpush.msra.mxu1 %v2849_v19  ;;  %828 = vmatpush.msra.mxu0 %v2870_v32 }
  0x79   :  { %738 = vmatpush.msrb.mxu3 %v2647_v25  ;;  %703 = vmatpush.msrb.mxu2 %v532_v26  ;;  %3631 = vst [vmem:[#allocation25_spill] sm:$0xff] %v2855_v21  ;;  %v2862_v25 = vsub.f32 %v784_v3, %v2841_v5  ;;  %v2866_v29 = vand.u32 4294901760, %v863_v20  ;;  %v2926_v26 = vsub.f32 %v780_v57, %v2908_v12 }
  0x7b   :  { %740 = vmatpush.msrb.mxu3 %v2660_v30  ;;  %707 = vmatpush.msrb.mxu2 %v538_v31  ;;  %3632 = vst [vmem:[#allocation26_spill] sm:$0xff] %v2862_v25  ;;  %v869_v30 = vsub.f32 %v2844_v15, %v2855_v21  ;;  %v2877_v37 = vand.u32 4294901760, %v2862_v25  ;;  %v2936_v31 = vand.u32 4294901760, %v2926_v26 }
  0x7c   :  { %865 = vmatpush.msra.mxu1 %v2866_v29  ;;  %3640 = vst [vmem:[#allocation34_spill] sm:$0xff] %v2926_v26 }
  0x7d   :  { %742 = vmatpush.msrb.mxu3 %v2675_v35  ;;  %3634 = vst [vmem:[#allocation28_spill] sm:$0xff] %v2877_v37  ;;  %711 = vmatpush.msrb.mxu2 %v544_v36  ;;  %v781_v35 = vld [vmem:[#allocation11 + $0x28] sm:$0xff]  ;;  %v2883_v39 = vand.u32 4294901760, %v869_v30  ;;  %v875_v51 = vsub.f32 %v2862_v25, %v2877_v37  ;;  %v899_v42 = vsub.f32 %v2926_v26, %v2936_v31 }
  0x7e   :  { %v2888_v45 = vand.u32 4294901760, %v781_v35  ;;  %3641 = vst [vmem:[#allocation35_spill] sm:$0xff] %v2936_v31 }
  0x7f   :  { %744 = vmatpush.msrb.mxu3 %v2686_v40  ;;  %715 = vmatpush.msrb.mxu2 %v550_v60  ;;  %v881_v40 = vsub.f32 %v2873_v34, %v2886_v43  ;;  %v2905_v6 = vand.u32 4294901760, %v875_v51  ;;  %v2966_v60 = vand.u32 4294901760, %v776_v50 }
  0x80   :  { %871 = vmatpush.msra.mxu1 %v2883_v39  ;;  %830 = vmatpush.msra.mxu0 %v2888_v45  ;;  %v2911_v9 = vsub.f32 %v781_v35, %v2888_v45 }
  0x81   :  { %746 = vmatpush.msrb.mxu3 %v2698_v46  ;;  %v2914_v46 = vand.u32 4294901760, %v881_v40  ;;  %v2979_v3 = vsub.f32 %v776_v50, %v2966_v60 }
  0x82   :  { %3638 = vst [vmem:[#allocation32_spill] sm:$0xff] %v2911_v9  ;;  %877 = vmatpush.msra.mxu1 %v2905_v6  ;;  %832 = vmatpush.msra.mxu0 %v2908_v12  ;;  %v2921_v22 = vand.u32 4294901760, %v2911_v9 }
  0x83   :  { %748 = vmatpush.msrb.mxu3 %v2710_v52  ;;  %v2929_v52 = vand.u32 4294901760, %v887_v18  ;;  %3647 = vst [vmem:[#allocation41_spill] sm:$0xff] %v2979_v3  ;;  %v2989_v20 = vand.u32 4294901760, %v2979_v3 }
  0x84   :  { %3639 = vst [vmem:[#allocation33_spill] sm:$0xff] %v2921_v22  ;;  %883 = vmatpush.msra.mxu1 %v2914_v46  ;;  %v893_v17 = vsub.f32 %v2911_v9, %v2921_v22  ;;  %834 = vmatpush.msra.mxu0 %v2923_v11 }
  0x85   :  { %750 = vmatpush.msrb.mxu3 %v2722_v58  ;;  %v777_v58 = vld [vmem:[#allocation11 + $0x8] sm:$0xff]  ;;  %3649 = vst [vmem:[#allocation43_spill] sm:$0xff] %v2989_v20  ;;  %v923_v51 = vsub.f32 %v2979_v3, %v2989_v20 }
  0x86   :  { %889 = vmatpush.msra.mxu1 %v2929_v52  ;;  %v2948_v41 = vand.u32 4294901760, %v893_v17  ;;  %836 = vmatpush.msra.mxu0 %v2938_v33  ;;  %v2956_v47 = vand.u32 4294901760, %v777_v58 }
  0x87   :  { %752 = vmatpush.msrb.mxu3 %v2773_v53  ;;  %v2962_v53 = vand.u32 4294901760, %v899_v42  ;;  %v3000_v18 = vand.u32 4294901760, %v923_v51 }
  0x88   :  { %895 = vmatpush.msra.mxu1 %v2948_v41  ;;  %838 = vmatpush.msra.mxu0 %v2956_v47  ;;  %v2973_v55 = vsub.f32 %v777_v58, %v2956_v47 }
  0x8a   :  { %3646 = vst [vmem:[#allocation40_spill] sm:$0xff] %v2973_v55  ;;  %901 = vmatpush.msra.mxu1 %v2962_v53  ;;  %840 = vmatpush.msra.mxu0 %v2966_v60  ;;  %v2985_v16 = vand.u32 4294901760, %v2973_v55 }
  0x8c   :  { %3648 = vst [vmem:[#allocation42_spill] sm:$0xff] %v2985_v16  ;;  %907 = vmatpush.msra.mxu1 %v2976_v0  ;;  %v917_v30 = vsub.f32 %v2973_v55, %v2985_v16 }
  0x8e   :  { %913 = vmatpush.msra.mxu1 %v2991_v27  ;;  %v2998_v57 = vand.u32 4294901760, %v917_v30 }
  0x90   :  { %919 = vmatpush.msra.mxu1 %v2998_v57 }
  0x92   :  { %925 = vmatpush.msra.mxu1 %v3000_v18 }
  0xaf   :  { %v410_v58 = vpop.f32.mrf.mxu1 }
  0xb3   :  { %v381_v17 = vpop.f32.mrf.mxu0 }
  0xb7   :  { %v206_v36 = vpop.f32.mrf.mxu2 }
  0xb8   :  { %v207_v61 = vadd.f32 %v2184_v38, %v206_v36 }
  0xbb   :  { %v267_v1 = vpop.f32.mrf.mxu3 }
  0xbc   :  { %v268_v35 = vadd.f32 %v267_v1, %v207_v61  ;;  %v811_v61 = vsel %vm809_vm1, %v775_v54, 0 }
  0xc3   :  { %v305_v40 = vpop.f32.mrf.mxu2 }
  0xc4   :  { %v306_v10 = vadd.f32 %v305_v40, %v268_v35  ;;  %v3006_v35 = vand.u32 4294901760, %v811_v61  ;;  %v804_v40 = vld [vmem:[#allocation13 + $0x78] sm:$0xff] }
  0xcb   :  { %v336_v28 = vpop.f32.mrf.mxu3 }
  0xcc   :  { %v337_v36 = vadd.f32 %v336_v28, %v306_v10  ;;  %v3014_v28 = vsub.f32 %v811_v61, %v3006_v35 }
  0xce   :  { %v382_v38 = vadd.f32 %v381_v17, %v337_v36  ;;  %v803_v17 = vld [vmem:[#allocation13 + $0x70] sm:$0xff]  ;;  %v3018_v36 = vand.u32 4294901760, %v804_v40 }
  0xd0   :  { %v411_v42 = vadd.f32 %v410_v58, %v382_v38  ;;  %v3022_v58 = vand.u32 4294901760, %v803_v17  ;;  %v843_v38 = vand.u32 4294901760, %v3014_v28 }
  0xd2   :  { %v413_v50 = vmax.f32 %v411_v42, 0.0  ;;  %v3030_v42 = vsub.f32 %v804_v40, %v3018_v36  ;;  %v3037_v54 = vsub.f32 %v803_v17, %v3022_v58  ;;  %v844_v61 = vsub.f32 %v3014_v28, %v843_v38 }
  0xd4   :  { %v449_v1 = vand.u32 4294901760, %v413_v50  ;;  %3650 = vst [vmem:[#allocation44_spill] sm:$0xff] %v3030_v42  ;;  %v845_v40 = vand.u32 4294901760, %v844_v61 }
  0xd5   :  { %3651 = vst [vmem:[#allocation45_spill] sm:$0xff] %v3037_v54 }
  0xd6   :  { %v450_v4 = vsub.f32 %v413_v50, %v449_v1  ;;  %555 = vmatmul.f32.vlgmr.msra.gmra.mxu3 %v449_v1  ;;  %v802_v50 = vld [vmem:[#allocation13 + $0x68] sm:$0xff] }
  0xd7   :  { %982 = vmatpush.msra.mxu3 %v2811_v59 }
  0xd8   :  { %609 = vmatmul.f32.vlgmr.msrb.gmra.mxu0 %v450_v4  ;;  %v451_v30 = vand.u32 4294901760, %v450_v4 }
  0xd9   :  { %984 = vmatpush.msra.mxu3 %v2818_v63  ;;  %1019 = vmatpush.msrb.mxu0 %v2825_v2 }
  0xda   :  { %v452_v51 = vsub.f32 %v450_v4, %v451_v30  ;;  %648 = vmatmul.f32.vlgmr.msrb.gmra.mxu1 %v451_v30  ;;  %v3042_v4 = vand.u32 4294901760, %v802_v50  ;;  %v3047_v30 = vand.u32 4294901760, %v3030_v42 }
  0xdb   :  { %986 = vmatpush.msra.mxu3 %v2827_v7  ;;  %1023 = vmatpush.msrb.mxu0 %v2839_v13 }
  0xdc   :  { %v453_v10 = vand.u32 4294901760, %v452_v51  ;;  %1074 = vmatpush.msrb.mxu1 %v2811_v59  ;;  %v3053_v51 = vand.u32 4294901760, %v3037_v54 }
  0xdd   :  { %988 = vmatpush.msra.mxu3 %v2841_v5  ;;  %1027 = vmatpush.msrb.mxu0 %v2855_v21 }
  0xde   :  { %454 = vmatmul.f32.vlgmr.msra.gmra.mxu2 %v453_v10  ;;  %754 = vmatmul.f32.vlgmr.msrb.gmra.mxu3 %v449_v1  ;;  %v3058_v10 = vsub.f32 %v802_v50, %v3042_v4  ;;  %v1156_v17 = vsub.f32 %v3037_v54, %v3053_v51 }
  0xdf   :  { %937 = vmatpush.msra.mxu2 %v2816_v62  ;;  %990 = vmatpush.msra.mxu3 %v2857_v23 }
  0xe0   :  { %1076 = vmatpush.msrb.mxu1 %v2818_v63  ;;  %1031 = vmatpush.msrb.mxu0 %v2877_v37  ;;  %3652 = vst [vmem:[#allocation46_spill] sm:$0xff] %v3058_v10  ;;  %v3072_v50 = vand.u32 4294901760, %v3058_v10 }
  0xe1   :  { %940 = vmatpush.msra.mxu2 %v2830_v8  ;;  %992 = vmatpush.msra.mxu3 %v2870_v32 }
  0xe2   :  { %1078 = vmatpush.msrb.mxu1 %v2827_v7  ;;  %1035 = vmatpush.msrb.mxu0 %v2886_v43 }
  0xe3   :  { %943 = vmatpush.msra.mxu2 %v2844_v15  ;;  %994 = vmatpush.msra.mxu3 %v2888_v45 }
  0xe4   :  { %1080 = vmatpush.msrb.mxu1 %v2841_v5  ;;  %1039 = vmatpush.msrb.mxu0 %v2903_v56 }
  0xe5   :  { %946 = vmatpush.msra.mxu2 %v2862_v25  ;;  %996 = vmatpush.msra.mxu3 %v2908_v12 }
  0xe6   :  { %717 = vmatmul.f32.vlgmr.msrb.gmra.mxu2 %v449_v1  ;;  %1082 = vmatpush.msrb.mxu1 %v2857_v23  ;;  %v1150_v1 = vsub.f32 %v3030_v42, %v3047_v30 }
  0xe7   :  { %949 = vmatpush.msra.mxu2 %v2873_v34  ;;  %998 = vmatpush.msra.mxu3 %v2923_v11  ;;  %v791_v34 = vld [vmem:[#allocation13 + $0x10] sm:$0xff] }
  0xe8   :  { %1043 = vmatpush.msrb.mxu0 %v2921_v22  ;;  %1084 = vmatpush.msrb.mxu1 %v2870_v32  ;;  %v3076_v61 = vand.u32 4294901760, %v1150_v1  ;;  %v800_v1 = vld [vmem:[#allocation13 + $0x58] sm:$0xff]  ;;  %v3245_v25 = vand.u32 4294901760, %v791_v34 }
  0xe9   :  { %952 = vmatpush.msra.mxu2 %v2891_v49  ;;  %1000 = vmatpush.msra.mxu3 %v2938_v33  ;;  %v792_v49 = vld [vmem:[#allocation13 + $0x18] sm:$0xff] }
  0xea   :  { %1047 = vmatpush.msrb.mxu0 %v2936_v31  ;;  %1086 = vmatpush.msrb.mxu1 %v2888_v45  ;;  %3653 = vst [vmem:[#allocation47_spill] sm:$0xff] %v3076_v61  ;;  %v3081_v31 = vand.u32 4294901760, %v1156_v17  ;;  %v3259_v15 = vsub.f32 %v791_v34, %v3245_v25 }
  0xeb   :  { %955 = vmatpush.msra.mxu2 %v2911_v9  ;;  %1002 = vmatpush.msra.mxu3 %v2956_v47  ;;  %v793_v9 = vld [vmem:[#allocation13 + $0x20] sm:$0xff]  ;;  %3677 = vst [vmem:[#allocation71_spill] sm:$0xff] %v3245_v25 }
  0xec   :  { %846 = vmatmul.f32.vlgmr.msra.gmra.mxu0 %v845_v40  ;;  %1088 = vmatpush.msrb.mxu1 %v2908_v12  ;;  %3654 = vst [vmem:[#allocation48_spill] sm:$0xff] %v3081_v31  ;;  %v1162_v40 = vsub.f32 %v3058_v10, %v3072_v50  ;;  %v3216_v37 = vand.u32 4294901760, %v793_v9 }
  0xed   :  { %958 = vmatpush.msra.mxu2 %v2926_v26  ;;  %1004 = vmatpush.msra.mxu3 %v2966_v60 }
  0xee   :  { %1008 = vmatmul.f32.vlgmr.msra.gmra.mxu3 %v843_v38  ;;  %1051 = vmatpush.msrb.mxu0 %v2954_v44  ;;  %v3095_v38 = vand.u32 4294901760, %v1162_v40  ;;  %v3118_v40 = vand.u32 4294901760, %v800_v1 }
  0xef   :  { %961 = vmatpush.msra.mxu2 %v2941_v24  ;;  %927 = vmatmul.f32.vlgmr.msra.gmra.mxu1 %v3006_v35  ;;  %v795_v24 = vld [vmem:[#allocation13 + $0x30] sm:$0xff] }
  0xf0   :  { %1055 = vmatpush.msrb.mxu0 %v2970_v14  ;;  %1090 = vmatpush.msrb.mxu1 %v2923_v11  ;;  %3655 = vst [vmem:[#allocation49_spill] sm:$0xff] %v3095_v38  ;;  %v3184_v56 = vand.u32 4294901760, %v795_v24 }
  0xf1   :  { %964 = vmatpush.msra.mxu2 %v2959_v48  ;;  %1152 = vmatpush.msrb.mxu3 %v3076_v61 }
  0xf2   :  { %1059 = vmatpush.msrb.mxu0 %v2985_v16  ;;  %1092 = vmatpush.msrb.mxu1 %v2938_v33  ;;  %v797_v16 = vld [vmem:[#allocation13 + $0x40] sm:$0xff] }
  0xf3   :  { %967 = vmatpush.msra.mxu2 %v2973_v55  ;;  %1158 = vmatpush.msrb.mxu3 %v3081_v31  ;;  %v3157_v44 = vand.u32 4294901760, %v797_v16  ;;  %v796_v55 = vld [vmem:[#allocation13 + $0x38] sm:$0xff] }
  0xf4   :  { %1063 = vmatpush.msrb.mxu0 %v2989_v20  ;;  %1094 = vmatpush.msrb.mxu1 %v2956_v47  ;;  %v3168_v22 = vand.u32 4294901760, %v796_v55 }
  0xf5   :  { %970 = vmatpush.msra.mxu2 %v2979_v3  ;;  %1065 = vmatmul.f32.vlgmr.msrb.gmra.mxu0 %v3006_v35 }
  0xf6   :  { %973 = vmatmul.f32.vlgmr.msra.gmra.mxu2 %v3014_v28  ;;  %1096 = vmatpush.msrb.mxu1 %v2966_v60 }
  0xf7   :  { %1098 = vmatmul.f32.vlgmr.msrb.gmra.mxu1 %v3006_v35  ;;  %1107 = vmatpush.msrb.mxu2 %v3018_v36  ;;  %v801_v35 = vld [vmem:[#allocation13 + $0x60] sm:$0xff] }
  0xf8   :  { %1164 = vmatpush.msrb.mxu3 %v3095_v38  ;;  %1250 = vmatpush.msra.mxu0 %v3030_v42  ;;  %v3112_v28 = vand.u32 4294901760, %v801_v35  ;;  %v799_v38 = vld [vmem:[#allocation13 + $0x50] sm:$0xff]  ;;  %v798_v42 = vld [vmem:[#allocation13 + $0x48] sm:$0xff] }
  0xf9   :  { %1109 = vmatpush.msrb.mxu2 %v3022_v58  ;;  %1303 = vmatpush.msra.mxu1 %v3018_v36  ;;  %v3128_v31 = vand.u32 4294901760, %v799_v38 }
  0xfa   :  { %1253 = vmatpush.msra.mxu0 %v3037_v54  ;;  %v3116_v17 = vsub.f32 %v801_v35, %v3112_v28 }
  0xfb   :  { %1111 = vmatpush.msrb.mxu2 %v3042_v4  ;;  %1305 = vmatpush.msra.mxu1 %v3022_v58  ;;  %v3139_v20 = vsub.f32 %v799_v38, %v3128_v31 }
  0xfc   :  { %1256 = vmatpush.msra.mxu0 %v3058_v10  ;;  %3656 = vst [vmem:[#allocation50_spill] sm:$0xff] %v3116_v17  ;;  %v3122_v54 = vand.u32 4294901760, %v3116_v17  ;;  %v3126_v10 = vsub.f32 %v800_v1, %v3118_v40  ;;  %v3141_v1 = vand.u32 4294901760, %v798_v42 }
  0xfd   :  { %1307 = vmatpush.msra.mxu1 %v3042_v4  ;;  %1113 = vmatpush.msrb.mxu2 %v3112_v28  ;;  %3658 = vst [vmem:[#allocation52_spill] sm:$0xff] %v3139_v20  ;;  %v3150_v3 = vand.u32 4294901760, %v3139_v20 }
  0xfe   :  { %3657 = vst [vmem:[#allocation51_spill] sm:$0xff] %v3126_v10  ;;  %1259 = vmatpush.msra.mxu0 %v3116_v17  ;;  %v1168_v35 = vsub.f32 %v3116_v17, %v3122_v54  ;;  %v3135_v61 = vand.u32 4294901760, %v3126_v10  ;;  %v3154_v38 = vsub.f32 %v798_v42, %v3141_v1  ;;  %v3173_v42 = vsub.f32 %v797_v16, %v3157_v44  ;;  %v794_v16 = vld [vmem:[#allocation13 + $0x28] sm:$0xff] }
  0xff   :  { %1309 = vmatpush.msra.mxu1 %v3112_v28  ;;  %1115 = vmatpush.msrb.mxu2 %v3118_v40 }
 0x100   :  { %1262 = vmatpush.msra.mxu0 %v3126_v10  ;;  %v3145_v14 = vand.u32 4294901760, %v1168_v35  ;;  %v1174_v17 = vsub.f32 %v3126_v10, %v3135_v61  ;;  %3660 = vst [vmem:[#allocation54_spill] sm:$0xff] %v3154_v38  ;;  %v1180_v10 = vsub.f32 %v3139_v20, %v3150_v3  ;;  %v3166_v48 = vand.u32 4294901760, %v3154_v38 }
 0x101   :  { %1311 = vmatpush.msra.mxu1 %v3118_v40  ;;  %1117 = vmatpush.msrb.mxu2 %v3128_v31  ;;  %3662 = vst [vmem:[#allocation56_spill] sm:$0xff] %v3173_v42  ;;  %v3187_v26 = vand.u32 4294901760, %v3173_v42 }
 0x102   :  { %3659 = vst [vmem:[#allocation53_spill] sm:$0xff] %v3145_v14  ;;  %1265 = vmatpush.msra.mxu0 %v3139_v20  ;;  %1170 = vmatpush.msrb.mxu3 %v3145_v14  ;;  %v3161_v35 = vand.u32 4294901760, %v1174_v17  ;;  %v3177_v17 = vand.u32 4294901760, %v1180_v10  ;;  %v1186_v20 = vsub.f32 %v3154_v38, %v3166_v48  ;;  %v3182_v14 = vsub.f32 %v796_v55, %v3168_v22 }
 0x103   :  { %1313 = vmatpush.msra.mxu1 %v3128_v31  ;;  %1119 = vmatpush.msrb.mxu2 %v3141_v1  ;;  %v3198_v55 = vsub.f32 %v795_v24, %v3184_v56  ;;  %v1192_v43 = vsub.f32 %v3173_v42, %v3187_v26 }
 0x104   :  { %3661 = vst [vmem:[#allocation55_spill] sm:$0xff] %v3161_v35  ;;  %1268 = vmatpush.msra.mxu0 %v3154_v38  ;;  %1176 = vmatpush.msrb.mxu3 %v3161_v35  ;;  %v3192_v10 = vand.u32 4294901760, %v1186_v20  ;;  %v3195_v35 = vand.u32 4294901760, %v3182_v14  ;;  %v3200_v38 = vand.u32 4294901760, %v794_v16 }
 0x105   :  { %1315 = vmatpush.msra.mxu1 %v3141_v1  ;;  %1121 = vmatpush.msrb.mxu2 %v3157_v44  ;;  %3663 = vst [vmem:[#allocation57_spill] sm:$0xff] %v3177_v17  ;;  %v3211_v24 = vand.u32 4294901760, %v3198_v55 }
 0x106   :  { %3664 = vst [vmem:[#allocation58_spill] sm:$0xff] %v3182_v14  ;;  %1271 = vmatpush.msra.mxu0 %v3173_v42  ;;  %1182 = vmatpush.msrb.mxu3 %v3177_v17  ;;  %v1198_v20 = vsub.f32 %v3182_v14, %v3195_v35  ;;  %v3214_v17 = vsub.f32 %v794_v16, %v3200_v38  ;;  %v3219_v42 = vand.u32 4294901760, %v1192_v43  ;;  %v3236_v43 = vand.u32 4294901760, %v792_v49 }
 0x107   :  { %1317 = vmatpush.msra.mxu1 %v3157_v44  ;;  %1123 = vmatpush.msrb.mxu2 %v3168_v22  ;;  %3665 = vst [vmem:[#allocation59_spill] sm:$0xff] %v3192_v10  ;;  %v3231_v16 = vsub.f32 %v793_v9, %v3216_v37 }
 0x108   :  { %3666 = vst [vmem:[#allocation60_spill] sm:$0xff] %v3195_v35  ;;  %1274 = vmatpush.msra.mxu0 %v3182_v14  ;;  %1188 = vmatpush.msrb.mxu3 %v3192_v10  ;;  %v3223_v10 = vand.u32 4294901760, %v1198_v20  ;;  %v1204_v14 = vsub.f32 %v3198_v55, %v3211_v24  ;;  %v3228_v21 = vand.u32 4294901760, %v3214_v17  ;;  %v3252_v9 = vsub.f32 %v792_v49, %v3236_v43 }
 0x109   :  { %3667 = vst [vmem:[#allocation61_spill] sm:$0xff] %v3198_v55  ;;  %1319 = vmatpush.msra.mxu1 %v3168_v22  ;;  %1125 = vmatpush.msrb.mxu2 %v3184_v56  ;;  %v3243_v13 = vand.u32 4294901760, %v3231_v16 }
 0x10a   :  { %3668 = vst [vmem:[#allocation62_spill] sm:$0xff] %v3211_v24  ;;  %1277 = vmatpush.msra.mxu0 %v3198_v55  ;;  %1194 = vmatpush.msrb.mxu3 %v3219_v42  ;;  %v3238_v20 = vand.u32 4294901760, %v1204_v14  ;;  %v1210_v55 = vsub.f32 %v3214_v17, %v3228_v21  ;;  %v790_v14 = vld [vmem:[#allocation13 + $0x8] sm:$0xff]  ;;  %v3267_v49 = vand.u32 4294901760, %v3252_v9 }
 0x10b   :  { %3669 = vst [vmem:[#allocation63_spill] sm:$0xff] %v3214_v17  ;;  %1321 = vmatpush.msra.mxu1 %v3184_v56  ;;  %1127 = vmatpush.msrb.mxu2 %v3200_v38  ;;  %v1216_v2 = vsub.f32 %v3231_v16, %v3243_v13  ;;  %v3261_v8 = vand.u32 4294901760, %v790_v14 }
 0x10c   :  { %3670 = vst [vmem:[#allocation64_spill] sm:$0xff] %v3219_v42  ;;  %1280 = vmatpush.msra.mxu0 %v3214_v17  ;;  %1200 = vmatpush.msrb.mxu3 %v3223_v10  ;;  %v3254_v42 = vand.u32 4294901760, %v1210_v55  ;;  %v789_v55 = vld [vmem:[#allocation13] sm:$0xff] }
 0x10d   :  { %3671 = vst [vmem:[#allocation65_spill] sm:$0xff] %v3223_v10  ;;  %1323 = vmatpush.msra.mxu1 %v3200_v38  ;;  %1129 = vmatpush.msrb.mxu2 %v3216_v37  ;;  %v3270_v17 = vand.u32 4294901760, %v1216_v2  ;;  %v3273_v10 = vand.u32 4294901760, %v3259_v15  ;;  %v3276_v34 = vsub.f32 %v790_v14, %v3261_v8  ;;  %v3278_v62 = vand.u32 4294901760, %v789_v55 }
 0x10e   :  { %3672 = vst [vmem:[#allocation66_spill] sm:$0xff] %v3228_v21  ;;  %1283 = vmatpush.msra.mxu0 %v3231_v16  ;;  %1206 = vmatpush.msrb.mxu3 %v3238_v20 }
 0x10f   :  { %3673 = vst [vmem:[#allocation67_spill] sm:$0xff] %v3231_v16  ;;  %1325 = vmatpush.msra.mxu1 %v3216_v37  ;;  %1131 = vmatpush.msrb.mxu2 %v3236_v43  ;;  %v1222_v16 = vsub.f32 %v3252_v9, %v3267_v49  ;;  %v1228_v2 = vsub.f32 %v3259_v15, %v3273_v10 }
 0x110   :  { %3674 = vst [vmem:[#allocation68_spill] sm:$0xff] %v3236_v43  ;;  %1286 = vmatpush.msra.mxu0 %v3252_v9  ;;  %1212 = vmatpush.msrb.mxu3 %v3254_v42  ;;  %v3292_v14 = vsub.f32 %v789_v55, %v3278_v62 }
 0x111   :  { %3675 = vst [vmem:[#allocation69_spill] sm:$0xff] %v3238_v20  ;;  %1327 = vmatpush.msra.mxu1 %v3236_v43  ;;  %1133 = vmatpush.msrb.mxu2 %v3245_v25  ;;  %v3289_v20 = vand.u32 4294901760, %v3276_v34 }
 0x112   :  { %3676 = vst [vmem:[#allocation70_spill] sm:$0xff] %v3243_v13  ;;  %1289 = vmatpush.msra.mxu0 %v3259_v15  ;;  %1218 = vmatpush.msrb.mxu3 %v3270_v17  ;;  %v3305_v43 = vand.u32 4294901760, %v3292_v14 }
 0x113   :  { %3678 = vst [vmem:[#allocation72_spill] sm:$0xff] %v3252_v9  ;;  %1329 = vmatpush.msra.mxu1 %v3245_v25  ;;  %1135 = vmatpush.msrb.mxu2 %v3261_v8  ;;  %v3300_v9 = vand.u32 4294901760, %v1228_v2  ;;  %v1234_v25 = vsub.f32 %v3276_v34, %v3289_v20 }
 0x114   :  { %3679 = vst [vmem:[#allocation73_spill] sm:$0xff] %v3254_v42  ;;  %v3297_v42 = vand.u32 4294901760, %v1222_v16  ;;  %1292 = vmatpush.msra.mxu0 %v3276_v34  ;;  %v1240_v55 = vsub.f32 %v3292_v14, %v3305_v43 }
 0x115   :  { %3680 = vst [vmem:[#allocation74_spill] sm:$0xff] %v3267_v49  ;;  %1331 = vmatpush.msra.mxu1 %v3261_v8  ;;  %1137 = vmatpush.msrb.mxu2 %v3278_v62  ;;  %v3311_v16 = vand.u32 4294901760, %v1234_v25 }
 0x116   :  { %3681 = vst [vmem:[#allocation75_spill] sm:$0xff] %v3273_v10  ;;  %1224 = vmatpush.msrb.mxu3 %v3297_v42  ;;  %1295 = vmatpush.msra.mxu0 %v3292_v14  ;;  %v3319_v2 = vand.u32 4294901760, %v1240_v55  ;;  %v3685_v55 = vld [vmem:[#allocation71_spill] sm:$0xff] }
 0x117   :  { %3682 = vst [vmem:[#allocation76_spill] sm:$0xff] %v3289_v20  ;;  %1344 = vmatpush.msra.mxu2 %v3047_v30  ;;  %1333 = vmatpush.msra.mxu1 %v3278_v62 }
 0x118   :  { %3683 = vst [vmem:[#allocation77_spill] sm:$0xff] %v3305_v43  ;;  %1230 = vmatpush.msrb.mxu3 %v3300_v9  ;;  %1506 = vmatpush.msrb.mxu0 %v2811_v59 }
 0x119   :  { %1348 = vmatpush.msra.mxu2 %v3053_v51  ;;  %1547 = vmatpush.msrb.mxu1 %v2849_v19  ;;  %v2185_v19 = vld [vmem:[%s3559_s6] ss:$0 sm:$0xff] }
 0x11a   :  { %1236 = vmatpush.msrb.mxu3 %v3311_v16  ;;  %1508 = vmatpush.msrb.mxu0 %v2818_v63 }
 0x11b   :  { %1352 = vmatpush.msra.mxu2 %v3072_v50  ;;  %1553 = vmatpush.msrb.mxu1 %v2866_v29 }
 0x11c   :  { %1242 = vmatpush.msrb.mxu3 %v3319_v2  ;;  %1510 = vmatpush.msrb.mxu0 %v2827_v7 }
 0x11d   :  { %1356 = vmatpush.msra.mxu2 %v3122_v54  ;;  %1559 = vmatpush.msrb.mxu1 %v2883_v39 }
 0x11e   :  { %1411 = vmatpush.msra.mxu3 %v3018_v36  ;;  %1512 = vmatpush.msrb.mxu0 %v2841_v5 }
 0x11f   :  { %1360 = vmatpush.msra.mxu2 %v3135_v61  ;;  %1565 = vmatpush.msrb.mxu1 %v2905_v6 }
 0x120   :  { %1413 = vmatpush.msra.mxu3 %v3022_v58  ;;  %1514 = vmatpush.msrb.mxu0 %v2857_v23 }
 0x121   :  { %1364 = vmatpush.msra.mxu2 %v3150_v3  ;;  %1571 = vmatpush.msrb.mxu1 %v2914_v46 }
 0x122   :  { %1415 = vmatpush.msra.mxu3 %v3042_v4  ;;  %1516 = vmatpush.msrb.mxu0 %v2870_v32 }
 0x123   :  { %1368 = vmatpush.msra.mxu2 %v3166_v48  ;;  %1577 = vmatpush.msrb.mxu1 %v2929_v52 }
 0x124   :  { %1417 = vmatpush.msra.mxu3 %v3112_v28  ;;  %1518 = vmatpush.msrb.mxu0 %v2888_v45 }
 0x125   :  { %1372 = vmatpush.msra.mxu2 %v3187_v26  ;;  %1583 = vmatpush.msrb.mxu1 %v2948_v41 }
 0x126   :  { %1419 = vmatpush.msra.mxu3 %v3118_v40  ;;  %1520 = vmatpush.msrb.mxu0 %v2908_v12 }
 0x127   :  { %1376 = vmatpush.msra.mxu2 %v3195_v35  ;;  %1589 = vmatpush.msrb.mxu1 %v2962_v53 }
 0x128   :  { %1421 = vmatpush.msra.mxu3 %v3128_v31  ;;  %1522 = vmatpush.msrb.mxu0 %v2923_v11 }
 0x129   :  { %1380 = vmatpush.msra.mxu2 %v3211_v24  ;;  %1595 = vmatpush.msrb.mxu1 %v2976_v0  ;;  %v3684_v0 = vld [vmem:[#allocation68_spill] sm:$0xff] }
 0x12a   :  { %1423 = vmatpush.msra.mxu3 %v3141_v1  ;;  %1524 = vmatpush.msrb.mxu0 %v2938_v33 }
 0x12b   :  { %1384 = vmatpush.msra.mxu2 %v3228_v21  ;;  %1601 = vmatpush.msrb.mxu1 %v2991_v27 }
 0x12c   :  { %1425 = vmatpush.msra.mxu3 %v3157_v44  ;;  %1526 = vmatpush.msrb.mxu0 %v2956_v47 }
 0x12d   :  { %1388 = vmatpush.msra.mxu2 %v3243_v13  ;;  %1607 = vmatpush.msrb.mxu1 %v2998_v57 }
 0x12e   :  { %1427 = vmatpush.msra.mxu3 %v3168_v22  ;;  %1528 = vmatpush.msrb.mxu0 %v2966_v60 }
 0x12f   :  { %1392 = vmatpush.msra.mxu2 %v3267_v49  ;;  %1613 = vmatpush.msrb.mxu1 %v3000_v18 }
 0x130   :  { %1429 = vmatpush.msra.mxu3 %v3184_v56 }
 0x131   :  { %1396 = vmatpush.msra.mxu2 %v3273_v10 }
 0x132   :  { %1431 = vmatpush.msra.mxu3 %v3200_v38 }
 0x133   :  { %1400 = vmatpush.msra.mxu2 %v3289_v20  ;;  %v1464_v20 = vld [vmem:[#allocation7] sm:$0xff] }
 0x134   :  { %1433 = vmatpush.msra.mxu3 %v3216_v37  ;;  %v1499_v49 = vsel %vm809_vm1, %v1464_v20, 0  ;;  %v3689_v20 = vld [vmem:[#allocation24_spill] sm:$0xff] }
 0x135   :  { %1404 = vmatpush.msra.mxu2 %v3305_v43  ;;  %v3387_v21 = vand.u32 4294901760, %v1499_v49 }
 0x136   :  { %1435 = vmatpush.msra.mxu3 %v3684_v0 }
 0x138   :  { %1437 = vmatpush.msra.mxu3 %v3685_v55 }
 0x13a   :  { %1439 = vmatpush.msra.mxu3 %v3261_v8 }
 0x13c   :  { %1441 = vmatpush.msra.mxu3 %v3278_v62 }
 0x155   :  { %v610_v46 = vpop.f32.mrf.mxu0 }
 0x157   :  { %v649_v41 = vpop.f32.mrf.mxu1 }
 0x159   :  { %v556_v25 = vpop.f32.mrf.mxu3 }
 0x161   :  { %v455_v29 = vpop.f32.mrf.mxu2  ;;  %v755_v18 = vpop.f32.mrf.mxu3 }
 0x162   :  { %v456_v39 = vadd.f32 %v2185_v19, %v455_v29  ;;  %v2186_v29 = vld [vmem:[%s3561_s8] ss:$0 sm:$0xff] }
 0x164   :  { %v557_v6 = vadd.f32 %v556_v25, %v456_v39 }
 0x166   :  { %v611_v52 = vadd.f32 %v610_v46, %v557_v6 }
 0x168   :  { %v650_v53 = vadd.f32 %v649_v41, %v611_v52 }
 0x169   :  { %v718_v27 = vpop.f32.mrf.mxu2  ;;  %v847_v39 = vpop.f32.mrf.mxu0 }
 0x16a   :  { %v719_v57 = vadd.f32 %v718_v27, %v650_v53  ;;  %v848_v6 = vadd.f32 %v2186_v29, %v847_v39  ;;  %v3687_v39 = vld [vmem:[#allocation20_spill] sm:$0xff] }
 0x16c   :  { %v3377_v19 = vadd.f32 %v755_v18, %v719_v57  ;;  %v928_v46 = vpop.f32.mrf.mxu1 }
 0x16d   :  { %v929_v52 = vadd.f32 %v928_v46, %v848_v6  ;;  %v3693_v46 = vld [vmem:[#allocation27_spill] sm:$0xff] }
 0x16e   :  { %3686 = vst [vmem:[#allocation68_spill] sm:$0xff] %v3377_v19  ;;  %v758_v25 = vmul.f32 %v3377_v19, %v3377_v19 }
 0x170   :  { %759 = vadd.xlane.f32.xlu0 %v758_v25  ;;  %v1530_v25 = vsub.f32 %v1499_v49, %v3387_v21  ;;  %v3690_v49 = vld [vmem:[#allocation21_spill] sm:$0xff] }
 0x171   :  { %v1009_v53 = vpop.f32.mrf.mxu3 }
 0x172   :  { %v1066_v57 = vpop.f32.mrf.mxu0 }
 0x174   :  { %v1099_v43 = vpop.f32.mrf.mxu1 }
 0x179   :  { %v974_v41 = vpop.f32.mrf.mxu2 }
 0x17a   :  { %v975_v27 = vadd.f32 %v974_v41, %v929_v52  ;;  %v3695_v52 = vld [vmem:[#allocation30_spill] sm:$0xff]  ;;  %v3696_v41 = vld [vmem:[#allocation28_spill] sm:$0xff] }
 0x17c   :  { %v1010_v18 = vadd.f32 %v1009_v53, %v975_v27  ;;  %v3697_v53 = vld [vmem:[#allocation32_spill] sm:$0xff]  ;;  %v3698_v27 = vld [vmem:[#allocation29_spill] sm:$0xff] }
 0x17e   :  { %v1067_v10 = vadd.f32 %v1066_v57, %v1010_v18  ;;  %v3700_v57 = vld [vmem:[#allocation31_spill] sm:$0xff]  ;;  %v3702_v18 = vld [vmem:[#allocation33_spill] sm:$0xff] }
 0x180   :  { %v1100_v19 = vadd.f32 %v1099_v43, %v1067_v10  ;;  %v3688_v10 = vld [vmem:[#allocation22_spill] sm:$0xff] }
 0x182   :  { %v1102_v13 = vmax.f32 %v1100_v19, 0.0  ;;  %v3691_v19 = vld [vmem:[#allocation26_spill] sm:$0xff] }
 0x184   :  { %v1138_v24 = vand.u32 4294901760, %v1102_v13 }
 0x186   :  { %v1139_v35 = vsub.f32 %v1102_v13, %v1138_v24  ;;  %1244 = vmatmul.f32.vlgmr.msrb.gmra.mxu3 %v1138_v24  ;;  %v1531_v13 = vand.u32 4294901760, %v1530_v25 }
 0x187   :  { %1762 = vmatpush.msrb.mxu3 %v2811_v59 }
 0x188   :  { %v1140_v29 = vand.u32 4294901760, %v1139_v35  ;;  %1298 = vmatmul.f32.vlgmr.msra.gmra.mxu0 %v1139_v35 }
 0x189   :  { %1625 = vmatpush.msra.mxu0 %v3687_v39  ;;  %1764 = vmatpush.msrb.mxu3 %v2818_v63  ;;  %v3706_v39 = vld [vmem:[#allocation37_spill] sm:$0xff] }
 0x18a   :  { %v1141_v6 = vsub.f32 %v1139_v35, %v1140_v29  ;;  %1337 = vmatmul.f32.vlgmr.msra.gmra.mxu1 %v1140_v29  ;;  %v1532_v35 = vsub.f32 %v1530_v25, %v1531_v13  ;;  %v3705_v29 = vld [vmem:[#allocation40_spill] sm:$0xff] }
 0x18b   :  { %1628 = vmatpush.msra.mxu0 %v3688_v10  ;;  %1670 = vmatpush.msra.mxu1 %v2811_v59  ;;  %v3692_v59 = vld [vmem:[#allocation23_spill] sm:$0xff] }
 0x18c   :  { %v1142_v43 = vand.u32 4294901760, %v1141_v6  ;;  %1766 = vmatpush.msrb.mxu3 %v2827_v7  ;;  %v3708_v6 = vld [vmem:[#allocation39_spill] sm:$0xff] }
 0x18d   :  { %1631 = vmatpush.msra.mxu0 %v3689_v20  ;;  %1672 = vmatpush.msra.mxu1 %v2818_v63  ;;  %v3694_v63 = vld [vmem:[#allocation25_spill] sm:$0xff]  ;;  %v3710_v10 = vld [vmem:[#allocation43_spill] sm:$0xff] }
 0x18e   :  { %1143 = vmatmul.f32.vlgmr.msrb.gmra.mxu2 %v1142_v43  ;;  %1443 = vmatmul.f32.vlgmr.msra.gmra.mxu3 %v1138_v24  ;;  %v3717_v43 = vld [vmem:[#allocation53_spill] sm:$0xff]  ;;  %v3719_v20 = vld [vmem:[#allocation55_spill] sm:$0xff] }
 0x18f   :  { %1707 = vmatpush.msrb.mxu2 %v3690_v49  ;;  %1634 = vmatpush.msra.mxu0 %v3691_v19  ;;  %v3720_v49 = vld [vmem:[#allocation51_spill] sm:$0xff]  ;;  %v3721_v19 = vld [vmem:[#allocation57_spill] sm:$0xff] }
 0x190   :  { %1674 = vmatpush.msra.mxu1 %v2827_v7  ;;  %1768 = vmatpush.msrb.mxu3 %v2841_v5  ;;  %v1533_v7 = vand.u32 4294901760, %v1532_v35  ;;  %v3722_v35 = vld [vmem:[#allocation52_spill] sm:$0xff] }
 0x191   :  { %1711 = vmatpush.msrb.mxu2 %v3692_v59  ;;  %1637 = vmatpush.msra.mxu0 %v3693_v46  ;;  %v3723_v59 = vld [vmem:[#allocation59_spill] sm:$0xff]  ;;  %v3724_v46 = vld [vmem:[#allocation54_spill] sm:$0xff] }
 0x192   :  { %1676 = vmatpush.msra.mxu1 %v2841_v5  ;;  %1770 = vmatpush.msrb.mxu3 %v2857_v23  ;;  %v3699_v5 = vld [vmem:[#allocation34_spill] sm:$0xff] }
 0x193   :  { %1715 = vmatpush.msrb.mxu2 %v3694_v63  ;;  %1640 = vmatpush.msra.mxu0 %v3695_v52  ;;  %v3725_v63 = vld [vmem:[#allocation64_spill] sm:$0xff] }
 0x194   :  { %1678 = vmatpush.msra.mxu1 %v2857_v23  ;;  %1772 = vmatpush.msrb.mxu3 %v2870_v32  ;;  %v3701_v23 = vld [vmem:[#allocation36_spill] sm:$0xff] }
 0x195   :  { %1719 = vmatpush.msrb.mxu2 %v3696_v41  ;;  %1643 = vmatpush.msra.mxu0 %v3697_v53  ;;  %v3726_v52 = vld [vmem:[#allocation56_spill] sm:$0xff]  ;;  %v3728_v41 = vld [vmem:[#allocation58_spill] sm:$0xff]  ;;  %v3729_v53 = vld [vmem:[#allocation69_spill] sm:$0xff] }
 0x196   :  { %1406 = vmatmul.f32.vlgmr.msra.gmra.mxu2 %v1138_v24  ;;  %1680 = vmatpush.msra.mxu1 %v2870_v32  ;;  %v3703_v32 = vld [vmem:[#allocation38_spill] sm:$0xff]  ;;  %v3704_v24 = vld [vmem:[#allocation35_spill] sm:$0xff] }
 0x197   :  { %1723 = vmatpush.msrb.mxu2 %v3698_v27  ;;  %1646 = vmatpush.msra.mxu0 %v3699_v5  ;;  %v3730_v27 = vld [vmem:[#allocation61_spill] sm:$0xff] }
 0x198   :  { %1682 = vmatpush.msra.mxu1 %v2888_v45  ;;  %1534 = vmatmul.f32.vlgmr.msrb.gmra.mxu0 %v1533_v7  ;;  %v3727_v7 = vld [vmem:[#allocation65_spill] sm:$0xff] }
 0x199   :  { %1727 = vmatpush.msrb.mxu2 %v3700_v57  ;;  %1649 = vmatpush.msra.mxu0 %v3701_v23  ;;  %v3731_v5 = vld [vmem:[#allocation73_spill] sm:$0xff]  ;;  %v3732_v57 = vld [vmem:[#allocation63_spill] sm:$0xff] }
 0x19a   :  { %1684 = vmatpush.msra.mxu1 %v2908_v12  ;;  %1774 = vmatpush.msrb.mxu3 %v2888_v45  ;;  %v3707_v45 = vld [vmem:[#allocation41_spill] sm:$0xff]  ;;  %v3733_v23 = vld [vmem:[#allocation67_spill] sm:$0xff] }
 0x19b   :  { %1731 = vmatpush.msrb.mxu2 %v3702_v18  ;;  %1615 = vmatmul.f32.vlgmr.msrb.gmra.mxu1 %v3387_v21  ;;  %v3734_v18 = vld [vmem:[#allocation72_spill] sm:$0xff] }
 0x19c   :  { %1652 = vmatpush.msra.mxu0 %v3703_v32  ;;  %1686 = vmatpush.msra.mxu1 %v2923_v11 }
 0x19d   :  { %1735 = vmatpush.msrb.mxu2 %v3704_v24  ;;  %1776 = vmatpush.msrb.mxu3 %v2908_v12  ;;  %v3709_v12 = vld [vmem:[#allocation42_spill] sm:$0xff] }
 0x19e   :  { %1655 = vmatpush.msra.mxu0 %v3705_v29  ;;  %1688 = vmatpush.msra.mxu1 %v2938_v33 }
 0x19f   :  { %1739 = vmatpush.msrb.mxu2 %v3706_v39  ;;  %1778 = vmatpush.msrb.mxu3 %v2923_v11  ;;  %v3711_v11 = vld [vmem:[#allocation47_spill] sm:$0xff] }
 0x1a0   :  { %1658 = vmatpush.msra.mxu0 %v3707_v45  ;;  %1690 = vmatpush.msra.mxu1 %v2956_v47 }
 0x1a1   :  { %1743 = vmatpush.msrb.mxu2 %v3708_v6  ;;  %1780 = vmatpush.msrb.mxu3 %v2938_v33  ;;  %v3712_v33 = vld [vmem:[#allocation44_spill] sm:$0xff] }
 0x1a2   :  { %1661 = vmatmul.f32.vlgmr.msra.gmra.mxu0 %v1530_v25  ;;  %1692 = vmatpush.msra.mxu1 %v2966_v60  ;;  %v3714_v25 = vld [vmem:[#allocation45_spill] sm:$0xff] }
 0x1a3   :  { %1747 = vmatpush.msrb.mxu2 %v3709_v12  ;;  %1782 = vmatpush.msrb.mxu3 %v2956_v47  ;;  %v3713_v47 = vld [vmem:[#allocation48_spill] sm:$0xff] }
 0x1a4   :  { %1696 = vmatmul.f32.vlgmr.msra.gmra.mxu1 %v1531_v13  ;;  %1795 = vmatpush.msrb.mxu0 %v3018_v36  ;;  %v3718_v13 = vld [vmem:[#allocation50_spill] sm:$0xff] }
 0x1a5   :  { %1751 = vmatpush.msrb.mxu2 %v3710_v10  ;;  %1784 = vmatpush.msrb.mxu3 %v2966_v60  ;;  %v3715_v60 = vld [vmem:[#allocation49_spill] sm:$0xff] }
 0x1a6   :  { %1753 = vmatmul.f32.vlgmr.msrb.gmra.mxu2 %v3387_v21  ;;  %1786 = vmatmul.f32.vlgmr.msrb.gmra.mxu3 %v3387_v21  ;;  %v3716_v21 = vld [vmem:[#allocation46_spill] sm:$0xff] }
 0x1a7   :  { %1840 = vmatpush.msrb.mxu1 %v3711_v11  ;;  %1797 = vmatpush.msrb.mxu0 %v3022_v58 }
 0x1a8   :  { %1938 = vmatpush.msra.mxu2 %v3712_v33  ;;  %1991 = vmatpush.msra.mxu3 %v3018_v36 }
 0x1a9   :  { %1846 = vmatpush.msrb.mxu1 %v3713_v47  ;;  %1799 = vmatpush.msrb.mxu0 %v3042_v4 }
 0x1aa   :  { %1941 = vmatpush.msra.mxu2 %v3714_v25  ;;  %1993 = vmatpush.msra.mxu3 %v3022_v58 }
 0x1ab   :  { %1852 = vmatpush.msrb.mxu1 %v3715_v60  ;;  %1801 = vmatpush.msrb.mxu0 %v3112_v28 }
 0x1ac   :  { %1944 = vmatpush.msra.mxu2 %v3716_v21  ;;  %1995 = vmatpush.msra.mxu3 %v3042_v4 }
 0x1ad   :  { %1858 = vmatpush.msrb.mxu1 %v3717_v43  ;;  %1803 = vmatpush.msrb.mxu0 %v3118_v40 }
 0x1ae   :  { %1947 = vmatpush.msra.mxu2 %v3718_v13  ;;  %1997 = vmatpush.msra.mxu3 %v3112_v28 }
 0x1af   :  { %1864 = vmatpush.msrb.mxu1 %v3719_v20  ;;  %1805 = vmatpush.msrb.mxu0 %v3128_v31 }
 0x1b0   :  { %1950 = vmatpush.msra.mxu2 %v3720_v49  ;;  %1999 = vmatpush.msra.mxu3 %v3118_v40 }
 0x1b1   :  { %1870 = vmatpush.msrb.mxu1 %v3721_v19  ;;  %1807 = vmatpush.msrb.mxu0 %v3141_v1 }
 0x1b2   :  { %1953 = vmatpush.msra.mxu2 %v3722_v35  ;;  %2001 = vmatpush.msra.mxu3 %v3128_v31 }
 0x1b3   :  { %1876 = vmatpush.msrb.mxu1 %v3723_v59  ;;  %1809 = vmatpush.msrb.mxu0 %v3157_v44 }
 0x1b4   :  { %1956 = vmatpush.msra.mxu2 %v3724_v46  ;;  %2003 = vmatpush.msra.mxu3 %v3141_v1 }
 0x1b5   :  { %1882 = vmatpush.msrb.mxu1 %v3725_v63  ;;  %1811 = vmatpush.msrb.mxu0 %v3168_v22 }
 0x1b6   :  { %1959 = vmatpush.msra.mxu2 %v3726_v52  ;;  %2005 = vmatpush.msra.mxu3 %v3157_v44 }
 0x1b7   :  { %1888 = vmatpush.msrb.mxu1 %v3727_v7  ;;  %1813 = vmatpush.msrb.mxu0 %v3184_v56 }
 0x1b8   :  { %1962 = vmatpush.msra.mxu2 %v3728_v41  ;;  %2007 = vmatpush.msra.mxu3 %v3168_v22 }
 0x1b9   :  { %1894 = vmatpush.msrb.mxu1 %v3729_v53  ;;  %1815 = vmatpush.msrb.mxu0 %v3200_v38 }
 0x1ba   :  { %1965 = vmatpush.msra.mxu2 %v3730_v27  ;;  %2009 = vmatpush.msra.mxu3 %v3184_v56 }
 0x1bb   :  { %1900 = vmatpush.msrb.mxu1 %v3731_v5  ;;  %1817 = vmatpush.msrb.mxu0 %v3216_v37 }
 0x1bc   :  { %1968 = vmatpush.msra.mxu2 %v3732_v57  ;;  %2011 = vmatpush.msra.mxu3 %v3200_v38 }
 0x1bd   :  { %1906 = vmatpush.msrb.mxu1 %v3270_v17  ;;  %1819 = vmatpush.msrb.mxu0 %v3684_v0 }
 0x1be   :  { %1971 = vmatpush.msra.mxu2 %v3733_v23  ;;  %2013 = vmatpush.msra.mxu3 %v3216_v37 }
 0x1bf   :  { %1912 = vmatpush.msrb.mxu1 %v3297_v42  ;;  %1821 = vmatpush.msrb.mxu0 %v3685_v55 }
 0x1c0   :  { %1974 = vmatpush.msra.mxu2 %v3734_v18  ;;  %2015 = vmatpush.msra.mxu3 %v3684_v0 }
 0x1c1   :  { %1918 = vmatpush.msrb.mxu1 %v3300_v9  ;;  %1823 = vmatpush.msrb.mxu0 %v3261_v8 }
 0x1c2   :  { %1977 = vmatpush.msra.mxu2 %v3259_v15  ;;  %2017 = vmatpush.msra.mxu3 %v3685_v55  ;;  %v3735_v15 = vld [vmem:[#allocation60_spill] sm:$0xff] }
 0x1c3   :  { %1924 = vmatpush.msrb.mxu1 %v3311_v16  ;;  %1825 = vmatpush.msrb.mxu0 %v3278_v62 }
 0x1c4   :  { %1980 = vmatpush.msra.mxu2 %v3276_v34  ;;  %2019 = vmatpush.msra.mxu3 %v3261_v8 }
 0x1c5   :  { %2032 = vmatpush.msra.mxu0 %v3047_v30  ;;  %1930 = vmatpush.msrb.mxu1 %v3319_v2  ;;  %v2188_v2 = vld [vmem:[%s3561_s8] ss:$0 sm:$0xff] }
 0x1c6   :  { %1983 = vmatpush.msra.mxu2 %v3292_v14  ;;  %2021 = vmatpush.msra.mxu3 %v3278_v62 }
 0x1c7   :  { %2099 = vmatpush.msra.mxu1 %v3018_v36  ;;  %2036 = vmatpush.msra.mxu0 %v3053_v51  ;;  %v3736_v36 = vld [vmem:[#allocation62_spill] sm:$0xff] }
 0x1c9   :  { %2101 = vmatpush.msra.mxu1 %v3022_v58  ;;  %2040 = vmatpush.msra.mxu0 %v3072_v50  ;;  %v3737_v58 = vld [vmem:[#allocation66_spill] sm:$0xff] }
 0x1cb   :  { %2103 = vmatpush.msra.mxu1 %v3042_v4  ;;  %2044 = vmatpush.msra.mxu0 %v3122_v54 }
 0x1cd   :  { %2105 = vmatpush.msra.mxu1 %v3112_v28  ;;  %2048 = vmatpush.msra.mxu0 %v3135_v61 }
 0x1cf   :  { %2107 = vmatpush.msra.mxu1 %v3118_v40  ;;  %2052 = vmatpush.msra.mxu0 %v3150_v3  ;;  %v3743_v40 = vld [vmem:[#allocation68_spill] sm:$0xff] }
 0x1d1   :  { %2109 = vmatpush.msra.mxu1 %v3128_v31  ;;  %2056 = vmatpush.msra.mxu0 %v3166_v48  ;;  %v3738_v31 = vld [vmem:[#allocation70_spill] sm:$0xff] }
 0x1d2   :  { %v3739_v48 = vld [vmem:[#allocation74_spill] sm:$0xff] }
 0x1d3   :  { %2111 = vmatpush.msra.mxu1 %v3141_v1  ;;  %2060 = vmatpush.msra.mxu0 %v3187_v26  ;;  %v3740_v26 = vld [vmem:[#allocation75_spill] sm:$0xff]  ;;  %v2187_v1 = vld [vmem:[%s3563_s10] ss:$0 sm:$0xff] }
 0x1d5   :  { %2113 = vmatpush.msra.mxu1 %v3157_v44  ;;  %2064 = vmatpush.msra.mxu0 %v3735_v15  ;;  %v2189_v15 = vld [vmem:[%s3563_s10] ss:$0 sm:$0xff]  ;;  %s2407_s10 = smov [#allocation14]  }
 0x1d6   :  { %s2156_s18 = sshll.u32 %s2407_s10, 4  ;;  %s2157_s18 = int_to_ptr.vmem [resolvable:$true] %s2156_s18 }
 0x1d7   :  { %2115 = vmatpush.msra.mxu1 %v3168_v22  ;;  %2068 = vmatpush.msra.mxu0 %v3736_v36  ;;  %v3741_v22 = vld [vmem:[#allocation76_spill] sm:$0xff] }
 0x1d9   :  { %2117 = vmatpush.msra.mxu1 %v3184_v56  ;;  %2072 = vmatpush.msra.mxu0 %v3737_v58  ;;  %v3742_v56 = vld [vmem:[#allocation77_spill] sm:$0xff] }
 0x1db   :  { %2119 = vmatpush.msra.mxu1 %v3200_v38  ;;  %2076 = vmatpush.msra.mxu0 %v3738_v31 }
 0x1dd   :  { %2121 = vmatpush.msra.mxu1 %v3216_v37  ;;  %2080 = vmatpush.msra.mxu0 %v3739_v48 }
 0x1df   :  { %2123 = vmatpush.msra.mxu1 %v3684_v0  ;;  %2084 = vmatpush.msra.mxu0 %v3740_v26 }
 0x1e1   :  { %2125 = vmatpush.msra.mxu1 %v3685_v55  ;;  %2088 = vmatpush.msra.mxu0 %v3741_v22 }
 0x1e3   :  { %2127 = vmatpush.msra.mxu1 %v3261_v8  ;;  %2092 = vmatpush.msra.mxu0 %v3742_v56  ;;  %v760_v44 = vpop.xlane.xlu0 %759 }
 0x1e4   :  { %v761_v3 = vmax.f32 %v760_v44, 1e-24 }
 0x1e5   :  { %2129 = vmatpush.msra.mxu1 %v3278_v62 }
 0x1e6   :  { %2190 = vrsqrt.f32 %v761_v3  ;;  %vm768_vm3 = vweird.f32 %v761_v3 }
 0x1ec   :  { %v2191_v37 = vpop.eup %2190 }
 0x1ed   :  { %v763_v54 = vmul.f32 %v2191_v37, %v761_v3  ;;  %vm769_vm2 = vweird.f32 %v2191_v37 }
 0x1ee   :  { %vm770_vm4 = vmor %vm768_vm3, %vm769_vm2 }
 0x1ef   :  { %v764_v4 = vmul.f32 %v2191_v37, %v763_v54 }
 0x1f1   :  { %v765_v30 = vmul.f32 0.5, %v764_v4 }
 0x1f3   :  { %v766_v51 = vsub.f32 1.5, %v765_v30 }
 0x1f5   :  { %v767_v50 = vmul.f32 %v2191_v37, %v766_v51 }
 0x1f7   :  { %v771_v61 = vsel %vm770_vm4, %v2191_v37, %v767_v50 }
 0x1f8   :  { %v772_v28 = vmul.f32 3.7796447, %v771_v61 }
 0x1fa   :  { %v773_v8 = vmul.f32 %v772_v28, %v3743_v40 }
 0x1fc   :  { %774 = vst [vmem:[#allocation14] sm:$0xff] %v773_v8 }
 0x205   :  { %v1299_v62 = vpop.f32.mrf.mxu0 }
 0x207   :  { %v1338_v9 = vpop.f32.mrf.mxu1 }
 0x209   :  { %v1245_v38 = vpop.f32.mrf.mxu3 }
 0x211   :  { %v1144_v42 = vpop.f32.mrf.mxu2  ;;  %v1444_v24 = vpop.f32.mrf.mxu3 }
 0x212   :  { %v1145_v17 = vadd.f32 %v2187_v1, %v1144_v42 }
 0x214   :  { %v1246_v34 = vadd.f32 %v1245_v38, %v1145_v17 }
 0x215   :  { %v1535_v16 = vpop.f32.mrf.mxu0 }
 0x216   :  { %v1300_v14 = vadd.f32 %v1299_v62, %v1246_v34  ;;  %v1536_v39 = vadd.f32 %v2188_v2, %v1535_v16 }
 0x218   :  { %v1339_v0 = vadd.f32 %v1338_v9, %v1300_v14  ;;  %v1616_v29 = vpop.f32.mrf.mxu1 }
 0x219   :  { %v1407_v55 = vpop.f32.mrf.mxu2  ;;  %v1617_v12 = vadd.f32 %v1616_v29, %v1536_v39 }
 0x21a   :  { %v1408_v32 = vadd.f32 %v1407_v55, %v1339_v0 }
 0x21c   :  { %v1445_v45 = vadd.f32 %v1444_v24, %v1408_v32 }
 0x21e   :  { %v1447_v6 = vmul.f32 %v1445_v45, %v1445_v45 }
 0x21f   :  { %v1662_v10 = vpop.f32.mrf.mxu0 }
 0x220   :  { %1448 = vadd.xlane.f32.xlu0 %v1447_v6  ;;  %v1663_v11 = vadd.f32 %v1662_v10, %v1617_v12 }
 0x221   :  { %v1697_v33 = vpop.f32.mrf.mxu1 }
 0x222   :  { %v1698_v47 = vadd.f32 %v1697_v33, %v1663_v11 }
 0x229   :  { %v1754_v25 = vpop.f32.mrf.mxu2  ;;  %v1787_v60 = vpop.f32.mrf.mxu3 }
 0x22a   :  { %v1755_v21 = vadd.f32 %v1754_v25, %v1698_v47 }
 0x22c   :  { %v1788_v43 = vadd.f32 %v1787_v60, %v1755_v21 }
 0x22e   :  { %v1790_v13 = vmax.f32 %v1788_v43, 0.0 }
 0x230   :  { %v1826_v20 = vand.u32 4294901760, %v1790_v13 }
 0x232   :  { %v1827_v49 = vsub.f32 %v1790_v13, %v1826_v20  ;;  %1932 = vmatmul.f32.vlgmr.msrb.gmra.mxu1 %v1826_v20 }
 0x234   :  { %v1828_v19 = vand.u32 4294901760, %v1827_v49  ;;  %1986 = vmatmul.f32.vlgmr.msra.gmra.mxu2 %v1827_v49 }
 0x236   :  { %v1829_v35 = vsub.f32 %v1827_v49, %v1828_v19  ;;  %2025 = vmatmul.f32.vlgmr.msra.gmra.mxu3 %v1828_v19 }
 0x238   :  { %v1830_v59 = vand.u32 4294901760, %v1829_v35 }
 0x23a   :  { %1831 = vmatmul.f32.vlgmr.msrb.gmra.mxu0 %v1830_v59  ;;  %2131 = vmatmul.f32.vlgmr.msra.gmra.mxu1 %v1826_v20 }
 0x242   :  { %2094 = vmatmul.f32.vlgmr.msra.gmra.mxu0 %v1826_v20 }
 0x293   :  { %v1449_v46 = vpop.xlane.xlu0 %1448 }
 0x294   :  { %v1450_v63 = vmax.f32 %v1449_v46, 1e-24 }
 0x296   :  { %2192 = vrsqrt.f32 %v1450_v63  ;;  %vm1457_vm6 = vweird.f32 %v1450_v63 }
 0x29c   :  { %v2193_v52 = vpop.eup %2192 }
 0x29d   :  { %v1452_v7 = vmul.f32 %v2193_v52, %v1450_v63  ;;  %vm1458_vm5 = vweird.f32 %v2193_v52 }
 0x29e   :  { %vm1459_vm7 = vmor %vm1457_vm6, %vm1458_vm5 }
 0x29f   :  { %v1453_v41 = vmul.f32 %v2193_v52, %v1452_v7 }
 0x2a1   :  { %v1454_v53 = vmul.f32 0.5, %v1453_v41 }
 0x2a3   :  { %v1455_v27 = vsub.f32 1.5, %v1454_v53 }
 0x2a5   :  { %v1456_v5 = vmul.f32 %v2193_v52, %v1455_v27 }
 0x2a7   :  { %v1460_v57 = vsel %vm1459_vm7, %v2193_v52, %v1456_v5 }
 0x2a8   :  { %v1461_v23 = vmul.f32 3.7796447, %v1460_v57 }
 0x2aa   :  { %v1462_v18 = vmul.f32 %v1461_v23, %v1445_v45 }
 0x2ac   :  { %1463 = vst [vmem:[#allocation14 + $0x8] sm:$0xff] %v1462_v18 }
 0x2af   :  { %v1933_v36 = vpop.f32.mrf.mxu1 }
 0x2b7   :  { %v1832_v58 = vpop.f32.mrf.mxu0  ;;  %v1987_v26 = vpop.f32.mrf.mxu2 }
 0x2b8   :  { %v1833_v31 = vadd.f32 %v2189_v15, %v1832_v58  ;;  %v2132_v54 = vpop.f32.mrf.mxu1 }
 0x2b9   :  { %v2026_v56 = vpop.f32.mrf.mxu3 }
 0x2ba   :  { %v1934_v48 = vadd.f32 %v1933_v36, %v1833_v31 }
 0x2bc   :  { %v1988_v22 = vadd.f32 %v1987_v26, %v1934_v48 }
 0x2be   :  { %v2027_v44 = vadd.f32 %v2026_v56, %v1988_v22 }
 0x2bf   :  { %v2095_v3 = vpop.f32.mrf.mxu0 }
 0x2c0   :  { %v2096_v37 = vadd.f32 %v2095_v3, %v2027_v44 }
 0x2c2   :  { %v2133_v4 = vadd.f32 %v2132_v54, %v2096_v37 }
 0x2c4   :  { %v2135_v30 = vmul.f32 %v2133_v4, %v2133_v4 }
 0x2c6   :  { %2136 = vadd.xlane.f32.xlu1 %v2135_v30 }
 0x339   :  { %v2137_v51 = vpop.xlane.xlu1 %2136 }
 0x33a   :  { %v2138_v50 = vmax.f32 %v2137_v51, 1e-24 }
 0x33c   :  { %2194 = vrsqrt.f32 %v2138_v50  ;;  %vm2145_vm9 = vweird.f32 %v2138_v50 }
 0x342   :  { %v2195_v61 = vpop.eup %2194 }
 0x343   :  { %v2140_v28 = vmul.f32 %v2195_v61, %v2138_v50  ;;  %vm2146_vm8 = vweird.f32 %v2195_v61 }
 0x344   :  { %vm2147_vm10 = vmor %vm2145_vm9, %vm2146_vm8 }
 0x345   :  { %v2141_v40 = vmul.f32 %v2195_v61, %v2140_v28 }
 0x347   :  { %v2142_v8 = vmul.f32 0.5, %v2141_v40 }
 0x349   :  { %v2143_v1 = vsub.f32 1.5, %v2142_v8 }
 0x34b   :  { %v2144_v62 = vmul.f32 %v2195_v61, %v2143_v1 }
 0x34d   :  { %v2148_v38 = vsel %vm2147_vm10, %v2195_v61, %v2144_v62 }
 0x34e   :  { %v2149_v42 = vmul.f32 3.7796447, %v2148_v38 }
 0x350   :  { %v2150_v17 = vmul.f32 %v2149_v42, %v2133_v4 }
 0x352   :  { %2151 = vst [vmem:[#allocation14 + $0x10] sm:$0xff] %v2150_v17 }
 0x353   :  { %2164 = dma.vmem_to_hbm [thread:$0]  %s2157_s18, 384, %s2159_s7, [#allocation4], %s2400_s27, %s2400_s27, %s2401_s28  }
 0x354   :  { %2396 = dma.done.wait [#allocation4], 384  }
 0x355   :  { %2397 = vsyncadd [#allocation4], 4294966912 }
 0x356   :  { %2169 = vsyncpa [#allocation3], 1 }
 0x357   :  { %2170 = vsyncpa [#allocation6], 1 }
 0x358   :  { %2171 = vsyncpa [#allocation9], 1 }
 0x359   :  { %2172 = vsyncpa [#allocation12], 1 }
 0x35a   :  { %2173 = vsyncpa [#allocation4], 1 }

</bundles_post_ra>
